<compile_context>
chip_gen: v7x
topology: tpu7x:2x2x1
jax: 0.10.0
libtpu: 0.0.40
codegen_flags: <defaults>
</compile_context>

<pallas_src>
import jax
import jax.numpy as jnp
from jax.experimental import pallas as pl
from jax.experimental.pallas import tpu as pltpu

SIZE = 50
EPS = 1e-5
LANE = 128


def _round_up(n, m=LANE):
    return ((n + m - 1) // m) * m


def _bn(h, g_ref, be_ref, inv_b_row, *, relu):
    """BatchNorm1d (training mode) over axis 0, reductions on the MXU.

    inv_b_row is a (1, B) row filled with 1/B, so the two matmuls directly
    produce E[x] and E[x^2].  gamma is folded into rsqrt and the mean into
    the shift, leaving a single (B, F) FMA pass (+ optional relu).
    """
    mean = jnp.dot(inv_b_row, h, preferred_element_type=jnp.float32)      # (1, F)
    ex2 = jnp.dot(inv_b_row, h * h, preferred_element_type=jnp.float32)   # (1, F)
    var = ex2 - mean * mean                                               # biased
    scale = jax.lax.rsqrt(var + EPS) * g_ref[...]                         # (1, F)
    shift = be_ref[...] - mean * scale
    y = h * scale + shift
    return jnp.maximum(y, 0.0) if relu else y


def mlp_kernel(x_ref,
               w1, g1, be1,
               w2, b2, g2, be2,
               w3, g3, be3,
               w4, g4, be4,
               o_ref):
    h = x_ref[0]                                   # (B, Din), already f32

    # Hoisted once (JAX does not CSE broadcast_in_dim): 1/B row for BN stats.
    bsz = h.shape[0]
    inv_b_row = jnp.full((1, bsz), 1.0 / bsz, dtype=jnp.float32)

    # layer 1: linear -> BN -> relu   (bias cancelled exactly by BN mean)
    h = jnp.dot(h, w1[...], preferred_element_type=jnp.float32)
    h = _bn(h, g1, be1, inv_b_row, relu=True)

    # layer 2: linear -> relu -> BN   (bias needed: ReLU precedes BN)
    h = jnp.dot(h, w2[...], preferred_element_type=jnp.float32) + b2[...]
    h = jnp.maximum(h, 0.0)
    h = _bn(h, g2, be2, inv_b_row, relu=False)

    # layer 3: linear -> BN -> relu
    h = jnp.dot(h, w3[...], preferred_element_type=jnp.float32)
    h = _bn(h, g3, be3, inv_b_row, relu=True)

    # layer 4: linear -> BN -> relu
    h = jnp.dot(h, w4[...], preferred_element_type=jnp.float32)
    h = _bn(h, g4, be4, inv_b_row, relu=True)

    o_ref[0] = h.astype(o_ref.dtype)


def init_params(key, input_dim):
    """PyTorch-default-style init (Linear: U(-1/sqrt(fan_in), ..);
    BatchNorm: gamma=1, beta=0).  Weights stored as (in, out)."""
    dims = [(input_dim, SIZE), (SIZE, SIZE * 2), (SIZE * 2, SIZE * 3), (SIZE * 3, SIZE)]
    params = []
    keys = jax.random.split(key, 2 * len(dims))
    for i, (fan_in, fan_out) in enumerate(dims):
        bound = 1.0 / (fan_in ** 0.5)
        w = jax.random.uniform(keys[2 * i], (fan_in, fan_out), jnp.float32, -bound, bound)
        b = jax.random.uniform(keys[2 * i + 1], (1, fan_out), jnp.float32, -bound, bound)
        gamma = jnp.ones((1, fan_out), jnp.float32)
        beta = jnp.zeros((1, fan_out), jnp.float32)
        params.extend([w, b, gamma, beta])
    return params


def _pad_cols(a, to):
    p = to - a.shape[-1]
    return a if p == 0 else jnp.pad(a, ((0, 0), (0, p)))


def _pad_rows(a, to):
    p = to - a.shape[0]
    return a if p == 0 else jnp.pad(a, ((0, p), (0, 0)))


def prepare_params(params):
    """One-time, out-of-the-hot-path padding of all parameters to lane-dense
    (multiple-of-128) feature widths.  b1/b3/b4 are dropped here: a bias that
    is immediately followed by BN is exactly cancelled by the mean subtract."""
    (w1, b1, g1, be1, w2, b2, g2, be2,
     w3, b3, g3, be3, w4, b4, g4, be4) = params
    del b1, b3, b4
    P1 = _round_up(SIZE)        # 50  -> 128
    P2 = _round_up(SIZE * 2)    # 100 -> 128
    P3 = _round_up(SIZE * 3)    # 150 -> 256
    P4 = _round_up(SIZE)        # 50  -> 128
    prepped = (
        _pad_cols(w1, P1), _pad_cols(g1, P1), _pad_cols(be1, P1),
        _pad_cols(_pad_rows(w2, P1), P2), _pad_cols(b2, P2),
        _pad_cols(g2, P2), _pad_cols(be2, P2),
        _pad_cols(_pad_rows(w3, P2), P3), _pad_cols(g3, P3), _pad_cols(be3, P3),
        _pad_cols(_pad_rows(w4, P3), P4), _pad_cols(g4, P4), _pad_cols(be4, P4),
    )
    # Materialize now so no pad work runs per forward call.
    return tuple(jax.block_until_ready(jax.device_put(p)) for p in prepped)


@jax.jit
def layers_forward(x, prepped):
    """Fused forward.

    x: (G, B, input_dim) f32 — G independent groups (e.g. MC / depth samples),
    each group gets its own BatchNorm batch statistics (identical to applying
    the PyTorch module separately per group).  Returns the lane-padded output
    (G, B, 128); real features are columns [:SIZE], padded columns are 0.
    """
    G, B, D = x.shape
    P4 = _round_up(SIZE)
    (w1p, g1p, be1p, w2p, b2p, g2p, be2p,
     w3p, g3p, be3p, w4p, g4p, be4p) = prepped

    # Advisory cost estimate so XLA schedules the surrounding graph sensibly.
    widths = (w1p.shape[1], w2p.shape[1], w3p.shape[1], w4p.shape[1])
    mm_flops = 2 * G * B * (D * widths[0] + widths[0] * widths[1]
                            + widths[1] * widths[2] + widths[2] * widths[3])
    feat = sum(widths)
    param_bytes = sum(int(p.size) for p in prepped) * 4
    cost = pl.CostEstimate(
        flops=mm_flops + 4 * G * B * feat,            # + BN reduction matmuls
        transcendentals=G * feat,                     # rsqrt per feature per layer
        bytes_accessed=param_bytes + G * B * (D + P4) * 4)

    in_specs = [pl.BlockSpec((1, B, D), lambda g: (g, 0, 0))]
    # Parameters: constant index_map -> loaded once, VMEM-resident across grid.
    in_specs += [pl.BlockSpec(p.shape, lambda g: (0, 0)) for p in prepped]

    return pl.pallas_call(
        mlp_kernel,
        out_shape=jax.ShapeDtypeStruct((G, B, P4), jnp.float32),
        grid=(G,),
        in_specs=in_specs,
        out_specs=pl.BlockSpec((1, B, P4), lambda g: (g, 0, 0)),
        compiler_params=pltpu.CompilerParams(
            dimension_semantics=("parallel",)),       # megacore sharding on v7x
        cost_estimate=cost,
    )(x, *prepped)


def layers_reference(x, params):
    """Pure-JAX reference (full PyTorch semantics, all biases included).
    x: (B, input_dim)."""
    (w1, b1, g1, be1, w2, b2, g2, be2,
     w3, b3, g3, be3, w4, b4, g4, be4) = params

    def bn(h, g, b):
        m = jnp.mean(h, axis=0, keepdims=True)
        v = jnp.mean((h - m) ** 2, axis=0, keepdims=True)
        return (h - m) / jnp.sqrt(v + EPS) * g + b

    h = x @ w1 + b1
    h = jnp.maximum(bn(h, g1, be1), 0.0)
    h = jnp.maximum(h @ w2 + b2, 0.0)
    h = bn(h, g2, be2)
    h = h @ w3 + b3
    h = jnp.maximum(bn(h, g3, be3), 0.0)
    h = h @ w4 + b4
    h = jnp.maximum(bn(h, g4, be4), 0.0)
    return h


if __name__ == "__main__":
    key = jax.random.PRNGKey(0)
    k_x, k_p = jax.random.split(key)

    groups, batch, input_dim = 2, 32, 32   # G independent BN groups of B rows
    x = jax.random.normal(k_x, (groups, batch, input_dim), dtype=jnp.float32)
    params = init_params(k_p, input_dim)
    prepped = prepare_params(params)       # one-time padding, outside hot path

    out_padded = layers_forward(x, prepped)          # (G, B, 128)
    out_padded = jax.block_until_ready(out_padded)
    out = out_padded[..., :SIZE]                     # consumer-side slice

    ref = jnp.stack([layers_reference(x[g], params) for g in range(groups)])
    assert out.shape == (groups, batch, SIZE)
    assert jnp.allclose(out, ref, atol=1e-4, rtol=1e-4), "mismatch vs reference"
    assert bool(jnp.all(out_padded[..., SIZE:] == 0.0)), "padded lanes not zero"

    print("KERNEL_OK")
</pallas_src>

<mosaic_0001>
module attributes {stable_mosaic.version = 11 : i64} {
  func.func @mlp_kernel(%arg0: i32, %arg1: memref<1x32x32xf32, #tpu.memory_space<vmem>>, %arg2: memref<32x128xf32, #tpu.memory_space<vmem>>, %arg3: memref<1x128xf32, #tpu.memory_space<vmem>>, %arg4: memref<1x128xf32, #tpu.memory_space<vmem>>, %arg5: memref<128x128xf32, #tpu.memory_space<vmem>>, %arg6: memref<1x128xf32, #tpu.memory_space<vmem>>, %arg7: memref<1x128xf32, #tpu.memory_space<vmem>>, %arg8: memref<1x128xf32, #tpu.memory_space<vmem>>, %arg9: memref<128x256xf32, #tpu.memory_space<vmem>>, %arg10: memref<1x256xf32, #tpu.memory_space<vmem>>, %arg11: memref<1x256xf32, #tpu.memory_space<vmem>>, %arg12: memref<256x128xf32, #tpu.memory_space<vmem>>, %arg13: memref<1x128xf32, #tpu.memory_space<vmem>>, %arg14: memref<1x128xf32, #tpu.memory_space<vmem>>, %arg15: memref<1x32x128xf32, #tpu.memory_space<vmem>>) attributes {dimension_semantics = [#tpu.dimension_semantics<parallel>], iteration_bounds = array<i64: 2>, scalar_prefetch = 0 : i64, scratch_operands = 0 : i64, tpu.core_type = #tpu.core_type<tc>, window_params = [{transform_indices = @transform_0, window_bounds = array<i64: 1, 32, 32>}, {pipeline_mode = #tpu.pipeline_mode<synchronous>, transform_indices = @transform_1, window_bounds = array<i64: 32, 128>}, {pipeline_mode = #tpu.pipeline_mode<synchronous>, transform_indices = @transform_2, window_bounds = array<i64: 1, 128>}, {pipeline_mode = #tpu.pipeline_mode<synchronous>, transform_indices = @transform_3, window_bounds = array<i64: 1, 128>}, {pipeline_mode = #tpu.pipeline_mode<synchronous>, transform_indices = @transform_4, window_bounds = array<i64: 128, 128>}, {pipeline_mode = #tpu.pipeline_mode<synchronous>, transform_indices = @transform_5, window_bounds = array<i64: 1, 128>}, {pipeline_mode = #tpu.pipeline_mode<synchronous>, transform_indices = @transform_6, window_bounds = array<i64: 1, 128>}, {pipeline_mode = #tpu.pipeline_mode<synchronous>, transform_indices = @transform_7, window_bounds = array<i64: 1, 128>}, {pipeline_mode = #tpu.pipeline_mode<synchronous>, transform_indices = @transform_8, window_bounds = array<i64: 128, 256>}, {pipeline_mode = #tpu.pipeline_mode<synchronous>, transform_indices = @transform_9, window_bounds = array<i64: 1, 256>}, {pipeline_mode = #tpu.pipeline_mode<synchronous>, transform_indices = @transform_10, window_bounds = array<i64: 1, 256>}, {pipeline_mode = #tpu.pipeline_mode<synchronous>, transform_indices = @transform_11, window_bounds = array<i64: 256, 128>}, {pipeline_mode = #tpu.pipeline_mode<synchronous>, transform_indices = @transform_12, window_bounds = array<i64: 1, 128>}, {pipeline_mode = #tpu.pipeline_mode<synchronous>, transform_indices = @transform_13, window_bounds = array<i64: 1, 128>}, {transform_indices = @transform_14, window_bounds = array<i64: 1, 32, 128>}]} {
    %c0 = arith.constant 0 : index
    %c0_0 = arith.constant 0 : index
    %c0_1 = arith.constant 0 : index
    %0 = vector.load %arg1[%c0, %c0_0, %c0_1] : memref<1x32x32xf32, #tpu.memory_space<vmem>>, vector<1x32x32xf32>
    %1 = vector.shape_cast %0 : vector<1x32x32xf32> to vector<32x32xf32>
    %cst = arith.constant 3.125000e-02 : f32
    %2 = vector.broadcast %cst : f32 to vector<1x32xf32>
    %c0_2 = arith.constant 0 : index
    %c0_3 = arith.constant 0 : index
    %3 = vector.load %arg2[%c0_2, %c0_3] : memref<32x128xf32, #tpu.memory_space<vmem>>, vector<32x128xf32>
    %cst_4 = arith.constant dense<0.000000e+00> : vector<32x128xf32>
    %4 = tpu.matmul %1, %3, %cst_4 {dimension_numbers = #tpu.dot_dimension_numbers<[1], [0], [0], [1], [0, 0, 1, 1], [], []>} : vector<32x32xf32>, vector<32x128xf32>, vector<32x128xf32> -> vector<32x128xf32>
    %cst_5 = arith.constant dense<0.000000e+00> : vector<1x128xf32>
    %5 = tpu.matmul %2, %4, %cst_5 {dimension_numbers = #tpu.dot_dimension_numbers<[1], [0], [0], [1], [0, 0, 1, 1], [], []>} : vector<1x32xf32>, vector<32x128xf32>, vector<1x128xf32> -> vector<1x128xf32>
    %6 = arith.mulf %4, %4 : vector<32x128xf32>
    %cst_6 = arith.constant dense<0.000000e+00> : vector<1x128xf32>
    %7 = tpu.matmul %2, %6, %cst_6 {dimension_numbers = #tpu.dot_dimension_numbers<[1], [0], [0], [1], [0, 0, 1, 1], [], []>} : vector<1x32xf32>, vector<32x128xf32>, vector<1x128xf32> -> vector<1x128xf32>
    %8 = arith.mulf %5, %5 : vector<1x128xf32>
    %9 = arith.subf %7, %8 : vector<1x128xf32>
    %cst_7 = arith.constant 9.99999974E-6 : f32
    %10 = vector.broadcast %cst_7 : f32 to vector<1x128xf32>
    %11 = arith.addf %9, %10 : vector<1x128xf32>
    %12 = math.rsqrt %11 : vector<1x128xf32>
    %c0_8 = arith.constant 0 : index
    %c0_9 = arith.constant 0 : index
    %13 = vector.load %arg3[%c0_8, %c0_9] : memref<1x128xf32, #tpu.memory_space<vmem>>, vector<1x128xf32>
    %14 = arith.mulf %12, %13 : vector<1x128xf32>
    %c0_10 = arith.constant 0 : index
    %c0_11 = arith.constant 0 : index
    %15 = vector.load %arg4[%c0_10, %c0_11] : memref<1x128xf32, #tpu.memory_space<vmem>>, vector<1x128xf32>
    %16 = arith.mulf %5, %14 : vector<1x128xf32>
    %17 = arith.subf %15, %16 : vector<1x128xf32>
    %18 = vector.broadcast %14 : vector<1x128xf32> to vector<32x128xf32>
    %19 = arith.mulf %4, %18 : vector<32x128xf32>
    %20 = vector.broadcast %17 : vector<1x128xf32> to vector<32x128xf32>
    %21 = arith.addf %19, %20 : vector<32x128xf32>
    %cst_12 = arith.constant 0.000000e+00 : f32
    %22 = vector.broadcast %cst_12 : f32 to vector<32x128xf32>
    %23 = arith.maximumf %21, %22 : vector<32x128xf32>
    %c0_13 = arith.constant 0 : index
    %c0_14 = arith.constant 0 : index
    %24 = vector.load %arg5[%c0_13, %c0_14] : memref<128x128xf32, #tpu.memory_space<vmem>>, vector<128x128xf32>
    %cst_15 = arith.constant dense<0.000000e+00> : vector<32x128xf32>
    %25 = tpu.matmul %23, %24, %cst_15 {dimension_numbers = #tpu.dot_dimension_numbers<[1], [0], [0], [1], [0, 0, 1, 1], [], []>} : vector<32x128xf32>, vector<128x128xf32>, vector<32x128xf32> -> vector<32x128xf32>
    %c0_16 = arith.constant 0 : index
    %c0_17 = arith.constant 0 : index
    %26 = vector.load %arg6[%c0_16, %c0_17] : memref<1x128xf32, #tpu.memory_space<vmem>>, vector<1x128xf32>
    %27 = vector.broadcast %26 : vector<1x128xf32> to vector<32x128xf32>
    %28 = arith.addf %25, %27 : vector<32x128xf32>
    %cst_18 = arith.constant 0.000000e+00 : f32
    %29 = vector.broadcast %cst_18 : f32 to vector<32x128xf32>
    %30 = arith.maximumf %28, %29 : vector<32x128xf32>
    %cst_19 = arith.constant dense<0.000000e+00> : vector<1x128xf32>
    %31 = tpu.matmul %2, %30, %cst_19 {dimension_numbers = #tpu.dot_dimension_numbers<[1], [0], [0], [1], [0, 0, 1, 1], [], []>} : vector<1x32xf32>, vector<32x128xf32>, vector<1x128xf32> -> vector<1x128xf32>
    %32 = arith.mulf %30, %30 : vector<32x128xf32>
    %cst_20 = arith.constant dense<0.000000e+00> : vector<1x128xf32>
    %33 = tpu.matmul %2, %32, %cst_20 {dimension_numbers = #tpu.dot_dimension_numbers<[1], [0], [0], [1], [0, 0, 1, 1], [], []>} : vector<1x32xf32>, vector<32x128xf32>, vector<1x128xf32> -> vector<1x128xf32>
    %34 = arith.mulf %31, %31 : vector<1x128xf32>
    %35 = arith.subf %33, %34 : vector<1x128xf32>
    %cst_21 = arith.constant 9.99999974E-6 : f32
    %36 = vector.broadcast %cst_21 : f32 to vector<1x128xf32>
    %37 = arith.addf %35, %36 : vector<1x128xf32>
    %38 = math.rsqrt %37 : vector<1x128xf32>
    %c0_22 = arith.constant 0 : index
    %c0_23 = arith.constant 0 : index
    %39 = vector.load %arg7[%c0_22, %c0_23] : memref<1x128xf32, #tpu.memory_space<vmem>>, vector<1x128xf32>
    %40 = arith.mulf %38, %39 : vector<1x128xf32>
    %c0_24 = arith.constant 0 : index
    %c0_25 = arith.constant 0 : index
    %41 = vector.load %arg8[%c0_24, %c0_25] : memref<1x128xf32, #tpu.memory_space<vmem>>, vector<1x128xf32>
    %42 = arith.mulf %31, %40 : vector<1x128xf32>
    %43 = arith.subf %41, %42 : vector<1x128xf32>
    %44 = vector.broadcast %40 : vector<1x128xf32> to vector<32x128xf32>
    %45 = arith.mulf %30, %44 : vector<32x128xf32>
    %46 = vector.broadcast %43 : vector<1x128xf32> to vector<32x128xf32>
    %47 = arith.addf %45, %46 : vector<32x128xf32>
    %c0_26 = arith.constant 0 : index
    %c0_27 = arith.constant 0 : index
    %48 = vector.load %arg9[%c0_26, %c0_27] : memref<128x256xf32, #tpu.memory_space<vmem>>, vector<128x256xf32>
    %cst_28 = arith.constant dense<0.000000e+00> : vector<32x256xf32>
    %49 = tpu.matmul %47, %48, %cst_28 {dimension_numbers = #tpu.dot_dimension_numbers<[1], [0], [0], [1], [0, 0, 1, 1], [], []>} : vector<32x128xf32>, vector<128x256xf32>, vector<32x256xf32> -> vector<32x256xf32>
    %cst_29 = arith.constant dense<0.000000e+00> : vector<1x256xf32>
    %50 = tpu.matmul %2, %49, %cst_29 {dimension_numbers = #tpu.dot_dimension_numbers<[1], [0], [0], [1], [0, 0, 1, 1], [], []>} : vector<1x32xf32>, vector<32x256xf32>, vector<1x256xf32> -> vector<1x256xf32>
    %51 = arith.mulf %49, %49 : vector<32x256xf32>
    %cst_30 = arith.constant dense<0.000000e+00> : vector<1x256xf32>
    %52 = tpu.matmul %2, %51, %cst_30 {dimension_numbers = #tpu.dot_dimension_numbers<[1], [0], [0], [1], [0, 0, 1, 1], [], []>} : vector<1x32xf32>, vector<32x256xf32>, vector<1x256xf32> -> vector<1x256xf32>
    %53 = arith.mulf %50, %50 : vector<1x256xf32>
    %54 = arith.subf %52, %53 : vector<1x256xf32>
    %cst_31 = arith.constant 9.99999974E-6 : f32
    %55 = vector.broadcast %cst_31 : f32 to vector<1x256xf32>
    %56 = arith.addf %54, %55 : vector<1x256xf32>
    %57 = math.rsqrt %56 : vector<1x256xf32>
    %c0_32 = arith.constant 0 : index
    %c0_33 = arith.constant 0 : index
    %58 = vector.load %arg10[%c0_32, %c0_33] : memref<1x256xf32, #tpu.memory_space<vmem>>, vector<1x256xf32>
    %59 = arith.mulf %57, %58 : vector<1x256xf32>
    %c0_34 = arith.constant 0 : index
    %c0_35 = arith.constant 0 : index
    %60 = vector.load %arg11[%c0_34, %c0_35] : memref<1x256xf32, #tpu.memory_space<vmem>>, vector<1x256xf32>
    %61 = arith.mulf %50, %59 : vector<1x256xf32>
    %62 = arith.subf %60, %61 : vector<1x256xf32>
    %63 = vector.broadcast %59 : vector<1x256xf32> to vector<32x256xf32>
    %64 = arith.mulf %49, %63 : vector<32x256xf32>
    %65 = vector.broadcast %62 : vector<1x256xf32> to vector<32x256xf32>
    %66 = arith.addf %64, %65 : vector<32x256xf32>
    %cst_36 = arith.constant 0.000000e+00 : f32
    %67 = vector.broadcast %cst_36 : f32 to vector<32x256xf32>
    %68 = arith.maximumf %66, %67 : vector<32x256xf32>
    %c0_37 = arith.constant 0 : index
    %c0_38 = arith.constant 0 : index
    %69 = vector.load %arg12[%c0_37, %c0_38] : memref<256x128xf32, #tpu.memory_space<vmem>>, vector<256x128xf32>
    %cst_39 = arith.constant dense<0.000000e+00> : vector<32x128xf32>
    %70 = tpu.matmul %68, %69, %cst_39 {dimension_numbers = #tpu.dot_dimension_numbers<[1], [0], [0], [1], [0, 0, 1, 1], [], []>} : vector<32x256xf32>, vector<256x128xf32>, vector<32x128xf32> -> vector<32x128xf32>
    %cst_40 = arith.constant dense<0.000000e+00> : vector<1x128xf32>
    %71 = tpu.matmul %2, %70, %cst_40 {dimension_numbers = #tpu.dot_dimension_numbers<[1], [0], [0], [1], [0, 0, 1, 1], [], []>} : vector<1x32xf32>, vector<32x128xf32>, vector<1x128xf32> -> vector<1x128xf32>
    %72 = arith.mulf %70, %70 : vector<32x128xf32>
    %cst_41 = arith.constant dense<0.000000e+00> : vector<1x128xf32>
    %73 = tpu.matmul %2, %72, %cst_41 {dimension_numbers = #tpu.dot_dimension_numbers<[1], [0], [0], [1], [0, 0, 1, 1], [], []>} : vector<1x32xf32>, vector<32x128xf32>, vector<1x128xf32> -> vector<1x128xf32>
    %74 = arith.mulf %71, %71 : vector<1x128xf32>
    %75 = arith.subf %73, %74 : vector<1x128xf32>
    %cst_42 = arith.constant 9.99999974E-6 : f32
    %76 = vector.broadcast %cst_42 : f32 to vector<1x128xf32>
    %77 = arith.addf %75, %76 : vector<1x128xf32>
    %78 = math.rsqrt %77 : vector<1x128xf32>
    %c0_43 = arith.constant 0 : index
    %c0_44 = arith.constant 0 : index
    %79 = vector.load %arg13[%c0_43, %c0_44] : memref<1x128xf32, #tpu.memory_space<vmem>>, vector<1x128xf32>
    %80 = arith.mulf %78, %79 : vector<1x128xf32>
    %c0_45 = arith.constant 0 : index
    %c0_46 = arith.constant 0 : index
    %81 = vector.load %arg14[%c0_45, %c0_46] : memref<1x128xf32, #tpu.memory_space<vmem>>, vector<1x128xf32>
    %82 = arith.mulf %71, %80 : vector<1x128xf32>
    %83 = arith.subf %81, %82 : vector<1x128xf32>
    %84 = vector.broadcast %80 : vector<1x128xf32> to vector<32x128xf32>
    %85 = arith.mulf %70, %84 : vector<32x128xf32>
    %86 = vector.broadcast %83 : vector<1x128xf32> to vector<32x128xf32>
    %87 = arith.addf %85, %86 : vector<32x128xf32>
    %cst_47 = arith.constant 0.000000e+00 : f32
    %88 = vector.broadcast %cst_47 : f32 to vector<32x128xf32>
    %89 = arith.maximumf %87, %88 : vector<32x128xf32>
    %c0_48 = arith.constant 0 : index
    %c0_49 = arith.constant 0 : index
    %c0_50 = arith.constant 0 : index
    %90 = vector.load %arg15[%c0_48, %c0_49, %c0_50] : memref<1x32x128xf32, #tpu.memory_space<vmem>>, vector<1x32x128xf32>
    %91 = vector.shape_cast %90 : vector<1x32x128xf32> to vector<32x128xf32>
    %92 = vector.shape_cast %89 : vector<32x128xf32> to vector<1x32x128xf32>
    tpu.vector_store %arg15[%c0_48, %c0_49, %c0_50], %92 {strides = array<i32>} : memref<1x32x128xf32, #tpu.memory_space<vmem>>, vector<1x32x128xf32>,
    return
  }
  func.func @transform_0(%arg0: i32) -> (i32, i32, i32) {
    %c0_i32 = arith.constant 0 : i32
    %c0_i32_0 = arith.constant 0 : i32
    %c0_i32_1 = arith.constant 0 : i32
    return %arg0, %c0_i32, %c0_i32_0 : i32, i32, i32
  }
  func.func @transform_1(%arg0: i32) -> (i32, i32) {
    %c0_i32 = arith.constant 0 : i32
    %c0_i32_0 = arith.constant 0 : i32
    %c0_i32_1 = arith.constant 0 : i32
    return %c0_i32, %c0_i32_0 : i32, i32
  }
  func.func @transform_2(%arg0: i32) -> (i32, i32) {
    %c0_i32 = arith.constant 0 : i32
    %c0_i32_0 = arith.constant 0 : i32
    %c0_i32_1 = arith.constant 0 : i32
    return %c0_i32, %c0_i32_0 : i32, i32
  }
  func.func @transform_3(%arg0: i32) -> (i32, i32) {
    %c0_i32 = arith.constant 0 : i32
    %c0_i32_0 = arith.constant 0 : i32
    %c0_i32_1 = arith.constant 0 : i32
    return %c0_i32, %c0_i32_0 : i32, i32
  }
  func.func @transform_4(%arg0: i32) -> (i32, i32) {
    %c0_i32 = arith.constant 0 : i32
    %c0_i32_0 = arith.constant 0 : i32
    %c0_i32_1 = arith.constant 0 : i32
    return %c0_i32, %c0_i32_0 : i32, i32
  }
  func.func @transform_5(%arg0: i32) -> (i32, i32) {
    %c0_i32 = arith.constant 0 : i32
    %c0_i32_0 = arith.constant 0 : i32
    %c0_i32_1 = arith.constant 0 : i32
    return %c0_i32, %c0_i32_0 : i32, i32
  }
  func.func @transform_6(%arg0: i32) -> (i32, i32) {
    %c0_i32 = arith.constant 0 : i32
    %c0_i32_0 = arith.constant 0 : i32
    %c0_i32_1 = arith.constant 0 : i32
    return %c0_i32, %c0_i32_0 : i32, i32
  }
  func.func @transform_7(%arg0: i32) -> (i32, i32) {
    %c0_i32 = arith.constant 0 : i32
    %c0_i32_0 = arith.constant 0 : i32
    %c0_i32_1 = arith.constant 0 : i32
    return %c0_i32, %c0_i32_0 : i32, i32
  }
  func.func @transform_8(%arg0: i32) -> (i32, i32) {
    %c0_i32 = arith.constant 0 : i32
    %c0_i32_0 = arith.constant 0 : i32
    %c0_i32_1 = arith.constant 0 : i32
    return %c0_i32, %c0_i32_0 : i32, i32
  }
  func.func @transform_9(%arg0: i32) -> (i32, i32) {
    %c0_i32 = arith.constant 0 : i32
    %c0_i32_0 = arith.constant 0 : i32
    %c0_i32_1 = arith.constant 0 : i32
    return %c0_i32, %c0_i32_0 : i32, i32
  }
  func.func @transform_10(%arg0: i32) -> (i32, i32) {
    %c0_i32 = arith.constant 0 : i32
    %c0_i32_0 = arith.constant 0 : i32
    %c0_i32_1 = arith.constant 0 : i32
    return %c0_i32, %c0_i32_0 : i32, i32
  }
  func.func @transform_11(%arg0: i32) -> (i32, i32) {
    %c0_i32 = arith.constant 0 : i32
    %c0_i32_0 = arith.constant 0 : i32
    %c0_i32_1 = arith.constant 0 : i32
    return %c0_i32, %c0_i32_0 : i32, i32
  }
  func.func @transform_12(%arg0: i32) -> (i32, i32) {
    %c0_i32 = arith.constant 0 : i32
    %c0_i32_0 = arith.constant 0 : i32
    %c0_i32_1 = arith.constant 0 : i32
    return %c0_i32, %c0_i32_0 : i32, i32
  }
  func.func @transform_13(%arg0: i32) -> (i32, i32) {
    %c0_i32 = arith.constant 0 : i32
    %c0_i32_0 = arith.constant 0 : i32
    %c0_i32_1 = arith.constant 0 : i32
    return %c0_i32, %c0_i32_0 : i32, i32
  }
  func.func @transform_14(%arg0: i32) -> (i32, i32, i32) {
    %c0_i32 = arith.constant 0 : i32
    %c0_i32_0 = arith.constant 0 : i32
    %c0_i32_1 = arith.constant 0 : i32
    return %arg0, %c0_i32, %c0_i32_0 : i32, i32, i32
  }
}

</mosaic_0001>

<bundles_post_ra>
// kernel: layers_forward.1
= control target key start
LH: loop header
LB: loop body
LE: loop exit
PB: predicated region body
PF: predicated region fallthrough
CT: control target
= control target key end

     0   :  { %s3208_s0 = inlined_call_operand.hbm [shape: f32[2,32,32], index: 0, kind: input, shape index: {}]   ;;  %s3209_s1 = inlined_call_operand.hbm [shape: f32[32,128], index: 1, kind: input, shape index: {}]   ;;  %s3210_s2 = inlined_call_operand.vmem [shape: f32[1,128], index: 2, kind: input, shape index: {}]   ;;  %s3211_s3 = inlined_call_operand.vmem [shape: f32[1,128], index: 3, kind: input, shape index: {}]   ;;  %s3212_s4 = inlined_call_operand.hbm [shape: f32[128,128], index: 4, kind: input, shape index: {}]   ;;  %s3213_s5 = inlined_call_operand.vmem [shape: f32[1,128], index: 5, kind: input, shape index: {}]   ;;  %s3214_s6 = inlined_call_operand.vmem [shape: f32[1,128], index: 6, kind: input, shape index: {}]   ;;  %s3215_s7 = inlined_call_operand.vmem [shape: f32[1,128], index: 7, kind: input, shape index: {}]   ;;  %s3216_s8 = inlined_call_operand.hbm [shape: f32[128,256], index: 8, kind: input, shape index: {}]   ;;  %s3217_s9 = inlined_call_operand.vmem [shape: f32[1,256], index: 9, kind: input, shape index: {}]   ;;  %s3218_s10 = inlined_call_operand.vmem [shape: f32[1,256], index: 10, kind: input, shape index: {}]   ;;  %s3219_s11 = inlined_call_operand.hbm [shape: f32[256,128], index: 11, kind: input, shape index: {}]   ;;  %s3220_s12 = inlined_call_operand.vmem [shape: f32[1,128], index: 12, kind: input, shape index: {}]   ;;  %s3221_s13 = inlined_call_operand.vmem [shape: f32[1,128], index: 13, kind: input, shape index: {}]   ;;  %s3222_s14 = inlined_call_operand.hbm [shape: f32[2,32,128], index: 14, kind: output, shape index: {}]  }
   0x1   :  { %3233 = sst [smem:[#allocation18_spill]] %s3209_s1 }
   0x2   :  { %3234 = sst [smem:[#allocation19_spill]] %s3217_s9 }
   0x3   :  { %3235 = sst [smem:[#allocation20_spill]] %s3218_s10 }
   0x4   :  { %3236 = sst [smem:[#allocation21_spill]] %s3220_s12 }
   0x5   :  { %3237 = sst [smem:[#allocation22_spill]] %s3221_s13 }
   0x6   :  { %3238 = sst [smem:[#allocation23_spill]] %s3222_s14 }
   0x7   :  { %19 = vsyncpa [#allocation3], 0 }
   0x8   :  { %21 = vsyncpa [#allocation3 + $0x1], 0 }
   0x9   :  { %22 = vsyncpa [#allocation6], 0 }
   0xa   :  { %23 = vsyncpa [#allocation9], 0 }
   0xb   :  { %24 = vsyncpa [#allocation4], 0 }
   0xc   :  { %26 = vsyncpa [#allocation4 + $0x1], 0  ;;  %s2721_s29 = smov 0   ;;  %s2723_s30 = smov 0  }
   0xd   :  { %s2725_s15 = smov 0   ;;  %s2727_s16 = smov 0  }
   0xe LB: > { %3239 = sst [smem:[#allocation16_spill]] %s2615_s29  ;;  %s2742_s17 = sadd.s32 4294967295, %s2627_s16   ;;  %s2627_s16 = sphi %s2727_s16, %s3271_s16   ;;  %s2623_s15 = sphi %s2725_s15, %s3270_s15   ;;  %s2619_s30 = sphi %s2723_s30, %s3269_s30   ;;  %s2615_s29 = sphi %s2721_s29, %s3268_s29  }
   0xf   : > { %s1890_s18 = sadd.s32 4294967294, %s2627_s16   ;;  %p52_p0 = scmp.ne.s32.totalorder %s2619_s30, %s2615_s29 }
  0x10   : > { %p3226_p1 = scmp.eq.s32.totalorder %s2742_s17, 0  ;;  %p355_p3 = scmp.eq.s32.totalorder %s1890_s18, 1 }
  0x11   : > { %p1891_p5 = scmp.ge.s32.totalorder %s2627_s16, 1  ;;  %p362_p7 = scmp.lt.s32.totalorder %s2627_s16, 3 }
  0x12   : > { %p2751_p4 = por %p3226_p1, %p52_p0  ;;  %p2756_p6 = por %p355_p3, %p52_p0 }
  0x13   : > { %p2761_p8 = pnand %p1891_p5, %p362_p7  ;;  %s2629_s22 = smov [#allocation5]  }
  0x14   : > { %s3240_s19 = scalar_select %p2751_p4, 1, 0 }
  0x15   : > { %s3241_s20 = scalar_select %p2756_p6, 1, 0 }
  0x16   : > { %s3243_s21 = scalar_select %p2761_p8, 1, 0 }
  0x17   : > { %3242 = sst [smem:[#allocation17_spill]] %s3241_s20  ;;  %s374_s23 = sshll.u32 %s2629_s22, 4  ;;  %s2765_s23 = int_to_ptr.vmem [resolvable:$true] %s374_s23 }
  0x18   : > { %p2323_p9 = pneg %p2761_p8  ;;  %s2630_s25 = smov [#allocation8]  }
  0x19   : > { %s415_s26 = sshll.u32 %s2630_s25, 4  ;;  %s3245_s1 = sld [smem:[#allocation18_spill]]  ;;  %s2776_s26 = int_to_ptr.vmem [resolvable:$true] %s415_s26 }
  0x1a   : > { %p2772_p11 = pnand %p2323_p9, %p3226_p1 }
  0x1c   : > { %p2786_p13 = pneg %p2772_p11 }
  0x1f   : > { %s2411_s18 = scalar_lea.hbm %s3245_s1, 512 }
  0x20   : > { %p2412_p12 = scmp.ne.s32.totalorder %s3245_s1, %s2411_s18  ;;  %p2418_p5 = scmp.lt.u32.totalorder %s2411_s18, %s3245_s1 }
  0x22   : > { %p2414_p0 = pnand %p2786_p13, %p2412_p12 }
  0x24   : > { %p2415_p3 = pneg %p2414_p0 }
  0x26   : > { %p2420_p7 = pnand %p2418_p5, %p2415_p3 }
  0x28   : > { %2423 = shalt.err (!%p2420_p7)
}
  0x29   : > { %s2424_s20 = scalar_lea.vmem %s2765_s23, 512  ;;  %p2432_p2 = scmp.lt.s32.totalorder %s2765_s23, %s2765_s23 }
  0x2a   : > { %p2425_p9 = scmp.ne.s32.totalorder %s2765_s23, %s2424_s20  ;;  %p2433_p6 = scmp.lt.s32.totalorder %s2424_s20, %s2424_s20 }
  0x2c   : > { %p2427_p10 = pnand %p2425_p9, %p2786_p13  ;;  %p2434_p12 = por %p2433_p6, %p2432_p2 }
  0x2e   : > { %p2428_p1 = pneg %p2427_p10 }
  0x30   : > { %p2435_p0 = pnand %p2434_p12, %p2428_p1 }
  0x32   : > { %2438 = shalt.err (!%p2435_p0)
}
  0x33   : > { %s3227_s27 = smov 128   ;;  %s3229_s14 = smov 8  }
  0x34   : > { %2326 = dma.hbm_to_vmem [thread:$0]  (!%p2772_p11), %s3245_s1, 512, %s2765_s23, [#allocation6], %s3227_s27, %s3227_s27, %s3229_s14  }
  0x35   : > { %s2439_s20 = scalar_lea.hbm %s3216_s8, 4096 }
  0x36   : > { %p2440_p1 = scmp.ne.s32.totalorder %s3216_s8, %s2439_s20  ;;  %p2446_p10 = scmp.lt.u32.totalorder %s2439_s20, %s3216_s8 }
  0x38   : > { %p2442_p2 = pnand %p2440_p1, %p2786_p13 }
  0x3a   : > { %p2443_p6 = pneg %p2442_p2 }
  0x3c   : > { %p2448_p3 = pnand %p2446_p10, %p2443_p6 }
  0x3e   : > { %2451 = shalt.err (!%p2448_p3)
}
  0x3f   : > { %s2452_s23 = scalar_lea.vmem %s2776_s26, 4096  ;;  %p2460_p12 = scmp.lt.s32.totalorder %s2776_s26, %s2776_s26 }
  0x40   : > { %p2453_p5 = scmp.ne.s32.totalorder %s2776_s26, %s2452_s23  ;;  %p2461_p0 = scmp.lt.s32.totalorder %s2452_s23, %s2452_s23 }
  0x42   : > { %p2455_p7 = pnand %p2453_p5, %p2786_p13  ;;  %p2462_p1 = por %p2461_p0, %p2460_p12 }
  0x44   : > { %p2456_p9 = pneg %p2455_p7 }
  0x46   : > { %p2463_p2 = pnand %p2462_p1, %p2456_p9 }
  0x48   : > { %2466 = shalt.err (!%p2463_p2)
}
  0x49   : > { %s2633_s12 = smov 256   ;;  %s2634_s9 = smov 16  }
  0x4a   : > { %2332 = dma.hbm_to_vmem [thread:$0]  (!%p2772_p11), %s3216_s8, 4096, %s2776_s26, [#allocation9], %s2633_s12, %s2633_s12, %s2634_s9  }
  0x4b   : > { %s2635_s28 = smov [#allocation7]   ;;  %s2636_s22 = smov [#allocation10]  }
  0x4c   : > { %s393_s18 = sshll.u32 %s2635_s28, 4  ;;  %s434_s25 = sshll.u32 %s2636_s22, 4  ;;  %s394_s18 = int_to_ptr.vmem [resolvable:$true] %s393_s18  ;;  %s2833_s25 = int_to_ptr.vmem [resolvable:$true] %s434_s25 }
  0x4d   : > { %s2467_s27 = scalar_lea.hbm %s3212_s4, 2048 }
  0x4e   : > { %p2468_p6 = scmp.ne.s32.totalorder %s3212_s4, %s2467_s27  ;;  %p2474_p5 = scmp.lt.u32.totalorder %s2467_s27, %s3212_s4 }
  0x50   : > { %p2470_p10 = pnand %p2468_p6, %p2786_p13 }
  0x52   : > { %p2471_p3 = pneg %p2470_p10 }
  0x54   : > { %p2476_p7 = pnand %p2474_p5, %p2471_p3 }
  0x56   : > { %2479 = shalt.err (!%p2476_p7)
}
  0x57   : > { %s2480_s12 = scalar_lea.vmem %s394_s18, 2048  ;;  %p2488_p1 = scmp.lt.s32.totalorder %s394_s18, %s394_s18 }
  0x58   : > { %p2481_p9 = scmp.ne.s32.totalorder %s394_s18, %s2480_s12  ;;  %p2489_p2 = scmp.lt.s32.totalorder %s2480_s12, %s2480_s12 }
  0x5a   : > { %p2483_p12 = pnand %p2481_p9, %p2786_p13  ;;  %p2490_p4 = por %p2489_p2, %p2488_p1 }
  0x5c   : > { %p2484_p0 = pneg %p2483_p12 }
  0x5e   : > { %p2491_p8 = pnand %p2490_p4, %p2484_p0 }
  0x60   : > { %2494 = shalt.err (!%p2491_p8)
}
  0x61   : > { %s3247_s1 = smov 8   ;;  %s3248_s14 = smov 128  }
  0x62   : > { %2329 = dma.hbm_to_vmem [thread:$0]  (!%p2772_p11), %s3212_s4, 2048, %s394_s18, [#allocation6], %s3248_s14, %s3248_s14, %s3247_s1  }
  0x63   : > { %s2495_s22 = scalar_lea.hbm %s3219_s11, 4096 }
  0x64   : > { %p2496_p6 = scmp.ne.s32.totalorder %s3219_s11, %s2495_s22  ;;  %p2502_p10 = scmp.lt.u32.totalorder %s2495_s22, %s3219_s11 }
  0x66   : > { %p2498_p4 = pnand %p2496_p6, %p2786_p13 }
  0x68   : > { %p2499_p8 = pneg %p2498_p4 }
  0x6a   : > { %p2504_p3 = pnand %p2502_p10, %p2499_p8 }
  0x6c   : > { %2507 = shalt.err (!%p2504_p3)
}
  0x6d   : > { %s2508_s18 = scalar_lea.vmem %s2833_s25, 4096  ;;  %p2516_p12 = scmp.lt.s32.totalorder %s2833_s25, %s2833_s25 }
  0x6e   : > { %p2509_p5 = scmp.ne.s32.totalorder %s2833_s25, %s2508_s18  ;;  %p2517_p0 = scmp.lt.s32.totalorder %s2508_s18, %s2508_s18 }
  0x70   : > { %p2511_p7 = pnand %p2509_p5, %p2786_p13  ;;  %p2518_p1 = por %p2517_p0, %p2516_p12 }
  0x72   : > { %p2512_p9 = pneg %p2511_p7 }
  0x74   : > { %p2519_p2 = pnand %p2518_p1, %p2512_p9 }
  0x76   : > { %2522 = shalt.err (!%p2519_p2)
}
  0x77   : > { %2335 = dma.hbm_to_vmem [thread:$0]  (!%p2772_p11), %s3219_s11, 4096, %s2833_s25, [#allocation9], %s3248_s14, %s3248_s14, %s3247_s1  }
  0x78   : > { %s2883_s29 = sadd.s32 1, %s2627_s16   ;;  %s39_s27 = sadd.s32 1, %s2623_s15 }
  0x79   : > { %s36_s24 = ssub.s32 %s2627_s16, %s2883_s29  ;;  %p46_p6 = scmp.ne.s32.totalorder %s2623_s15, %s2619_s30 }
  0x7a   : > { %p37_p13 = scmp.eq.s32.totalorder %s36_s24, 0  ;;  %p47_p4 = scmp.eq.s32.totalorder %s2627_s16, 0 }
  0x7b   : > { %p3249_p10 = scmp.eq.s32.totalorder %s2742_s17, 1  ;;  %p2348_p5 = scmp.lt.s32.totalorder %s2627_s16, 2 }
  0x7c   : > { %s2892_s13 = scalar_select %p37_p13, %s2623_s15, %s39_s27  }
  0x7d   : > { %p48_p8 = por %p47_p4, %p46_p6  ;;  %p2896_p3 = por %p3249_p10, %p46_p6 }
  0x7e   : > { %s454_s22 = sand.u32 1, %s2623_s15   ;;  %s1925_s25 = sshll.u32 %s2627_s16, 9 }
  0x7f   : > { %s1897_s20 = sshll.u32 %s454_s22, 5  ;;  %s2906_s26 = scalar_lea.hbm %s3208_s0, %s1925_s25 }
  0x80   : > { %s458_s18 = scalar_lea.vmem [#allocation2], %s1897_s20  ;;  %p2910_p11 = pnand %p2348_p5, %p48_p8 }
  0x81   : > { %s465_s12 = sshll.u32 %s458_s18, 4  ;;  %s2914_s24 = scalar_lea.sflag [#allocation3], %s454_s22  ;;  %s2908_s12 = int_to_ptr.vmem [resolvable:$true] %s465_s12 }
  0x82   : > { %s2523_s27 = scalar_lea.hbm %s2906_s26, 512  ;;  %p2525_p9 = pneg %p2910_p11 }
  0x83   : > { %p2524_p7 = scmp.ne.s32.totalorder %s2906_s26, %s2523_s27  ;;  %s2528_s23 = scalar_lea.hbm %s3208_s0, 1024 }
  0x84   : > { %p2529_p1 = scmp.lt.u32.totalorder %s2906_s26, %s3208_s0  ;;  %p2530_p2 = scmp.lt.u32.totalorder %s2528_s23, %s2523_s27 }
  0x85   : > { %p2526_p12 = pnand %p2525_p9, %p2524_p7  ;;  %p2532_p6 = scmp.lt.u32.totalorder %s2523_s27, %s2906_s26 }
  0x86   : > { %p2531_p13 = por %p2530_p2, %p2529_p1 }
  0x87   : > { %p2527_p0 = pneg %p2526_p12 }
  0x88   : > { %p2533_p4 = por %p2532_p6, %p2531_p13 }
  0x8a   : > { %p2534_p8 = pnand %p2533_p4, %p2527_p0 }
  0x8c   : > { %2537 = shalt.err (!%p2534_p8)
}
  0x8d   : > { %s2538_s22 = scalar_lea.vmem %s2908_s12, 512  ;;  %s2637_s20 = smov [#allocation2]  }
  0x8e   : > { %p2539_p10 = scmp.ne.s32.totalorder %s2908_s12, %s2538_s22  ;;  %s2543_s25 = sshll.u32 %s2637_s20, 4  ;;  %s2544_s25 = int_to_ptr.vmem [resolvable:$false] %s2543_s25 }
  0x8f   : > { %s2545_s10 = scalar_lea.vmem %s2544_s25, 1024  ;;  %p2546_p12 = scmp.lt.s32.totalorder %s2908_s12, %s2544_s25 }
  0x90   : > { %p2541_p5 = pnand %p2539_p10, %p2525_p9  ;;  %p2547_p1 = scmp.lt.s32.totalorder %s2545_s10, %s2538_s22 }
  0x92   : > { %p2542_p7 = pneg %p2541_p5  ;;  %p2548_p2 = por %p2547_p1, %p2546_p12 }
  0x94   : > { %p2549_p13 = pnand %p2548_p2, %p2542_p7 }
  0x96   : > { %2552 = shalt.err (!%p2549_p13)
}
  0x97   : > { %2339 = dma.hbm_to_vmem [thread:$0]  (!%p2910_p11), %s2906_s26, 512, %s2908_s12, %s2914_s24, %s3248_s14, %s3248_s14, %s3247_s1  }
  0x98   : > { %p3252_p9 = scmp.ne.s32.totalorder %s3243_s21, 0 }
  0x99   : > { %s2948_s27 = sand.u32 (!%p3252_p9), 1, %s2619_s30   ;;  %p3253_p0 = scmp.ne.s32.totalorder (!%p3252_p9), %s3240_s19, 0 }
  0x9a   : > { %477 = sbr.rel (%p3252_p9) target bundleno = 2102 (0x836), region = 76  ;;  %s1901_s23 = sshll.u32 (!%p3252_p9), %s2948_s27, 5 }
  0x9b   : > { %s480_s18 = scalar_lea.sflag (!%p3252_p9), [#allocation3], %s2948_s27  ;;  %s483_s9 = scalar_lea.vmem (!%p3252_p9), [#allocation2], %s1901_s23 }
  0xa1   : > { %2598 = dma.done.wait (%p3253_p0), %s480_s18, 512  }
  0xa2   : > { %2600 = vsyncadd (%p3253_p0), %s480_s18, 4294966784  ;;  %p3254_p11 = scmp.eq.s32.totalorder %s2742_s17, 0 }
  0xa4   : > { %2602 = dma.done.wait (%p3254_p11), [#allocation6], 2560   ;;  %p3255_p6 = pmov %p3254_p11 }
  0xa6   : > { %2604 = vsyncadd (%p3255_p6), [#allocation6], 4294964736  ;;  %p3256_p4 = pmov %p3255_p6 }
  0xa8   : > { %2606 = dma.done.wait (%p3256_p4), [#allocation9], 8192   ;;  %p3257_p8 = pmov %p3256_p4 }
  0xa9   : > { %vm552_vm0 = vcmask 261120   ;;  %v548_v0 = vld [vmem:[#allocation5] sm:$0xff]  ;;  %v549_v1 = vld [vmem:[#allocation5 + $0x8] sm:$0xff]  ;;  %v550_v2 = vld [vmem:[#allocation5 + $0x10] sm:$0xff]  ;;  %v2638_v10 = vmov 0.0|0.0   ;;  %vm2639_vm1 = vmmov 0   ;;  %v806_v56 = vlaneseq }
  0xaa   : > { %2608 = vsyncadd (%p3257_p8), [#allocation9], 4294959104  ;;  %v2147_v3 = vpack.c.bf16 %v549_v1, %v548_v0  ;;  %v551_v4 = vld [vmem:[#allocation5 + $0x18] sm:$0xff]  ;;  %v544_v5 = vld [vmem:[%s483_s9] sm:$0xff]  ;;  %v2640_v11 = vmov 0.0   ;;  %v2641_v24 = vmov 0.03125  }
  0xab   : > { %v2151_v6 = vpack.c.bf16 %v551_v4, %v550_v2  ;;  %2037 = vmatprep.mubr.msk.f32.mxu0 %vm552_vm0, %v544_v5  ;;  %v545_v7 = vld [vmem:[%s483_s9 + $0x8] sm:$0xff]  ;;  %v546_v8 = vld [vmem:[%s483_s9 + $0x10] sm:$0xff]  ;;  %v547_v9 = vld [vmem:[%s483_s9 + $0x18] sm:$0xff]  ;;  %v3005_v57 = vshrl.u32 %v806_v56, 7  ;;  %s3258_s9 = sld [smem:[#allocation19_spill]]  ;;  %s3259_s1 = sld [smem:[#allocation20_spill]] }
  0xac   : > { %2148 = vmatprep.subr.bf16.mxu0 %v2147_v3  ;;  %v828_v25 = vld [vmem:[#allocation7] sm:$0xff]  ;;  %v829_v26 = vld [vmem:[#allocation7 + $0x8] sm:$0xff]  ;;  %v830_v28 = vld [vmem:[#allocation7 + $0x10] sm:$0xff]  ;;  %s3260_s12 = sld [smem:[#allocation21_spill]]  ;;  %s3261_s20 = sld [smem:[#allocation22_spill]] }
  0xad   : > { %2150 = vmatpush3.bf16.msra.mxu0 %v2147_v3  ;;  %v2167_v27 = vpack.c.bf16 %v829_v26, %v828_v25  ;;  %v831_v29 = vld [vmem:[#allocation7 + $0x18] sm:$0xff]  ;;  %v832_v31 = vld [vmem:[#allocation7 + $0x20] sm:$0xff]  ;;  %v833_v32 = vld [vmem:[#allocation7 + $0x28] sm:$0xff]  ;;  %v3011_v59 = vsub.s32 0, %v3005_v57  ;;  %s1926_s25 = sshll.u32 %s2742_s17, 9  ;;  %s543_s10 = scalar_lea.vmem [#allocation11], %s1901_s23 }
  0xae   : > { %2152 = vmatprep.subr.bf16.mxu0 %v2151_v6  ;;  %v2171_v30 = vpack.c.bf16 %v831_v29, %v830_v28  ;;  %v2175_v33 = vpack.c.bf16 %v833_v32, %v832_v31  ;;  %v834_v34 = vld [vmem:[#allocation7 + $0x30] sm:$0xff]  ;;  %v835_v35 = vld [vmem:[#allocation7 + $0x38] sm:$0xff]  ;;  %v836_v36 = vld [vmem:[#allocation7 + $0x40] sm:$0xff]  ;;  %s1779_s18 = sshll.u32 %s543_s10, 4  ;;  %s3262_s21 = sld [smem:[#allocation23_spill]]  ;;  %s3164_s18 = int_to_ptr.vmem [resolvable:$true] %s1779_s18 }
  0xaf   : > { %2168 = vmatprep.subr.bf16.mxu1 %v2167_v27  ;;  %v2179_v37 = vpack.c.bf16 %v835_v35, %v834_v34  ;;  %v837_v38 = vld [vmem:[#allocation7 + $0x48] sm:$0xff]  ;;  %v838_v40 = vld [vmem:[#allocation7 + $0x50] sm:$0xff]  ;;  %v839_v41 = vld [vmem:[#allocation7 + $0x58] sm:$0xff]  ;;  %s1766_s17 = scalar_lea.sflag [#allocation4], %s2948_s27  ;;  %s2553_s23 = scalar_lea.vmem %s3164_s18, 512 }
  0xb0   : > { %2170 = vmatpush3.bf16.msra.mxu1 %v2167_v27  ;;  %v2183_v39 = vpack.c.bf16 %v837_v38, %v836_v36  ;;  %v2187_v42 = vpack.c.bf16 %v839_v41, %v838_v40  ;;  %v840_v43 = vld [vmem:[#allocation7 + $0x60] sm:$0xff]  ;;  %v841_v44 = vld [vmem:[#allocation7 + $0x68] sm:$0xff]  ;;  %v842_v46 = vld [vmem:[#allocation7 + $0x70] sm:$0xff]  ;;  %p2554_p10 = scmp.ne.s32.totalorder %s3164_s18, %s2553_s23  ;;  %s2643_s14 = smov [#allocation11]  }
  0xb1   : > { %2154 = vmatpush3.bf16.msra.mxu0 %v2151_v6  ;;  %2172 = vmatprep.subr.bf16.mxu1 %v2171_v30  ;;  %v2191_v45 = vpack.c.bf16 %v841_v44, %v840_v43  ;;  %v843_v47 = vld [vmem:[#allocation7 + $0x78] sm:$0xff]  ;;  %v801_v58 = vld [vmem:[%s3210_s2] sm:$0x1]  ;;  %v1113_v43 = vld [vmem:[#allocation8 + $0x10] sm:$0xff]  ;;  %s2557_s26 = sshll.u32 %s2643_s14, 4  ;;  %s2558_s26 = int_to_ptr.vmem [resolvable:$false] %s2557_s26 }
  0xb2   : > { %2155 = vmatprep.subr.bf16.mxu0 %v2638_v10  ;;  %v2195_v48 = vpack.c.bf16 %v843_v47, %v842_v46  ;;  %v803_v62 = vld [vmem:[%s3211_s3] sm:$0x1]  ;;  %v1114_v40 = vld [vmem:[#allocation8 + $0x18] sm:$0xff]  ;;  %v1116_v44 = vld [vmem:[#allocation8 + $0x28] sm:$0xff]  ;;  %p2555_p5 = pnand %p2554_p10, %p2896_p3  ;;  %p2560_p12 = scmp.lt.s32.totalorder %s3164_s18, %s2558_s26 }
  0xb3   : > { %v1118_v46 = vld [vmem:[#allocation8 + $0x38] sm:$0xff]  ;;  %v1115_v47 = vld [vmem:[#allocation8 + $0x20] sm:$0xff] }
  0xb4   : > { %2038 = vmatmul.mubr.msk.f32.vlgmr.msra.gmra.mrb[0].mxu0 %vm552_vm0, %v545_v7  ;;  %2174 = vmatpush3.bf16.msra.mxu1 %v2171_v30  ;;  %p2556_p7 = pneg %p2555_p5 }
  0xb5   : > { %2040 = vmatprep.mubr.msk.f32.mxu0 %vm552_vm0, %v546_v8  ;;  %2176 = vmatprep.subr.bf16.mxu1 %v2175_v33 }
  0xb8   : > { %2041 = vmatmul.mubr.msk.f32.gmra.mrb[2].mxu0 %vm552_vm0, %v547_v9  ;;  %2178 = vmatpush3.bf16.msra.mxu1 %v2175_v33 }
  0xb9   : > { %2051 = vmatprep.mubr.msk.f32.mxu0 %vm2639_vm1, %v2640_v11  ;;  %2180 = vmatprep.subr.bf16.mxu1 %v2179_v37 }
  0xbc   : > { %2182 = vmatpush3.bf16.msra.mxu1 %v2179_v37 }
  0xbd   : > { %2184 = vmatprep.subr.bf16.mxu1 %v2183_v39 }
  0xc0   : > { %2186 = vmatpush3.bf16.msra.mxu1 %v2183_v39  ;;  %v1112_v39 = vld [vmem:[#allocation8 + $0x8] sm:$0xff] }
  0xc1   : > { %2188 = vmatprep.subr.bf16.mxu1 %v2187_v42  ;;  %v2211_v41 = vpack.c.bf16 %v1114_v40, %v1112_v39  ;;  %v1088_v39 = vld [vmem:[%s3214_s6] sm:$0x1] }
  0xc4   : > { %2190 = vmatpush3.bf16.msra.mxu1 %v2187_v42  ;;  %v1111_v42 = vld [vmem:[#allocation8] sm:$0xff] }
  0xc5   : > { %2192 = vmatprep.subr.bf16.mxu1 %v2191_v45 }
  0xc8   : > { %2194 = vmatpush3.bf16.msra.mxu1 %v2191_v45  ;;  %v2213_v45 = vpack.c.bf16 %v1113_v43, %v1111_v42  ;;  %v1090_v42 = vld [vmem:[%s3215_s7] sm:$0x1] }
  0xc9   : > { %2196 = vmatprep.subr.bf16.mxu1 %v2195_v48 }
  0xcc   : > { %2198 = vmatpush3.bf16.msra.mxu1 %v2195_v48  ;;  %v1117_v48 = vld [vmem:[#allocation8 + $0x30] sm:$0xff] }
 0x187   : > { %v2973_v12 = vpop.f32.mrb[0].mxu0 }
 0x188   : > { %v724_v13 = vmul.f32 %v2973_v12, %v2973_v12  ;;  %v2977_v14 = vpop.f32.mrb[1].mxu0 }
 0x189   : > { %v2156_v15 = vpack.c.bf16 %v2973_v12, %v2977_v14  ;;  %v723_v16 = vmul.f32 %v2977_v14, %v2977_v14 }
 0x18b   : > { %v2162_v17 = vpack.c.bf16 %v724_v13, %v723_v16  ;;  %v2983_v18 = vpop.f32.mrb[2].mxu0  ;;  %2157 = vmatpush3.bf16.msra.mxu0 %v2156_v15 }
 0x18c   : > { %v726_v19 = vmul.f32 %v2983_v18, %v2983_v18  ;;  %v2987_v20 = vpop.f32.mrb[3].mxu0  ;;  %2158 = vmatprep.subr.bf16.mxu0 %v2638_v10 }
 0x18d   : > { %v2159_v21 = vpack.c.bf16 %v2983_v18, %v2987_v20  ;;  %v725_v22 = vmul.f32 %v2987_v20, %v2987_v20 }
 0x18f   : > { %v2165_v23 = vpack.c.bf16 %v726_v19, %v725_v22  ;;  %2160 = vmatpush3.bf16.msra.mxu0 %v2159_v21 }
 0x190   : > { %2161 = vmatprep.subr.bf16.mxu0 %v2638_v10 }
 0x192   : > { %2052 = vmatmul.mubr.msk.f32.vlgmr.msra.gmra.mrb[4].mxu0 %vm552_vm0, %v2641_v24 }
 0x193   : > { %2163 = vmatpush3.bf16.msra.mxu0 %v2162_v17  ;;  %2062 = vmatprep.mubr.msk.f32.mxu0 %vm2639_vm1, %v2640_v11 }
 0x194   : > { %2164 = vmatprep.subr.bf16.mxu0 %v2638_v10 }
 0x197   : > { %2166 = vmatpush3.bf16.msra.mxu0 %v2165_v23 }
 0x198   : > { %2199 = vmatprep.subr.bf16.mxu0 %v2638_v10 }
 0x19a   : > { %2063 = vmatmul.mubr.msk.f32.vlgmr.msra.gmra.mrb[6].mxu0 %vm552_vm0, %v2641_v24 }
 0x19b   : > { %2111 = vmatprep.mubr.msk.f32.mxu0 %vm2639_vm1, %v2640_v11 }
 0x265   : > { %v719_v49 = vpop.f32.mrb[4].mxu0 }
 0x266   : > { %v2053_v50 = vpop.f32.mrb[5].mxu0  ;;  %v797_v51 = vmul.f32 %v719_v49, %v719_v49 }
 0x267   : > { %v2217_v50 = vpack.c.bf16 %v1117_v48, %v1115_v47 }
 0x26d   : > { %v793_v52 = vpop.f32.mrb[6].mxu0 }
 0x26e   : > { %v798_v53 = vsub.f32 %v793_v52, %v797_v51  ;;  %v2064_v54 = vpop.f32.mrb[7].mxu0  ;;  %v1120_v51 = vld [vmem:[#allocation8 + $0x48] sm:$0xff]  ;;  %v1122_v52 = vld [vmem:[#allocation8 + $0x58] sm:$0xff] }
 0x26f   : > { %v1119_v54 = vld [vmem:[#allocation8 + $0x40] sm:$0xff] }
 0x270   : > { %v799_v55 = vadd.f32 1e-05, %v798_v53  ;;  %v2219_v53 = vpack.c.bf16 %v1122_v52, %v1120_v51 }
 0x272   : > { %2401 = vrsqrt.f32 %v799_v55  ;;  %v1121_v55 = vld [vmem:[#allocation8 + $0x50] sm:$0xff] }
 0x273   : > { %v2221_v56 = vpack.c.bf16 %v1121_v55, %v1119_v54 }
 0x27c   : > { %v2402_v60 = vpop.eup %2401 }
 0x27d   : > { %v802_v61 = vmul.f32 %v2402_v60, %v801_v58  ;;  %v1124_v58 = vld [vmem:[#allocation8 + $0x68] sm:$0xff]  ;;  %v1126_v60 = vld [vmem:[#allocation8 + $0x78] sm:$0xff] }
 0x27f   : > { %v804_v63 = vmul.f32 %v802_v61, %v719_v49  ;;  %v809_v0 = vrot.slane %v802_v61, %v3011_v59  ;;  %v2215_v49 = vpack.c.bf16 %v1118_v46, %v1116_v44  ;;  %v2223_v61 = vpack.c.bf16 %v1126_v60, %v1124_v58 }
 0x281   : > { %v805_v1 = vsub.f32 %v803_v62, %v804_v63  ;;  %v810_v2 = vmul.f32 %v809_v0, %v2977_v14  ;;  %v811_v3 = vmul.f32 %v2973_v12, %v809_v0  ;;  %v812_v4 = vmul.f32 %v809_v0, %v2987_v20  ;;  %v1913_v12 = vld [vmem:[%s3213_s5] ss:$0 sm:$0xff]  ;;  %v1125_v63 = vld [vmem:[#allocation8 + $0x70] sm:$0xff] }
 0x282   : > { %v813_v5 = vmul.f32 %v2983_v18, %v809_v0  ;;  %v1123_v62 = vld [vmem:[#allocation8 + $0x60] sm:$0xff] }
 0x283   : > { %v818_v6 = vrot.slane %v805_v1, %v3011_v59  ;;  %v2225_v0 = vpack.c.bf16 %v1125_v63, %v1123_v62  ;;  %v1128_v1 = vld [vmem:[#allocation8 + $0x88] sm:$0xff] }
 0x285   : > { %v820_v7 = vadd.f32 %v818_v6, %v810_v2  ;;  %v821_v8 = vadd.f32 %v818_v6, %v811_v3  ;;  %v822_v9 = vadd.f32 %v818_v6, %v812_v4  ;;  %v823_v13 = vadd.f32 %v818_v6, %v813_v5  ;;  %v1130_v2 = vld [vmem:[#allocation8 + $0x98] sm:$0xff]  ;;  %v1127_v4 = vld [vmem:[#allocation8 + $0x80] sm:$0xff]  ;;  %v1129_v5 = vld [vmem:[#allocation8 + $0x90] sm:$0xff] }
 0x286   : > { %v2227_v3 = vpack.c.bf16 %v1130_v2, %v1128_v1  ;;  %v2229_v6 = vpack.c.bf16 %v1129_v5, %v1127_v4 }
 0x287   : > { %v824_v15 = vmax.f32 %v820_v7, 0.0  ;;  %v825_v16 = vmax.f32 %v821_v8, 0.0  ;;  %v826_v17 = vmax.f32 %v822_v9, 0.0  ;;  %v827_v19 = vmax.f32 %v823_v13, 0.0  ;;  %v1132_v7 = vld [vmem:[#allocation8 + $0xa8] sm:$0xff]  ;;  %v1134_v8 = vld [vmem:[#allocation8 + $0xb8] sm:$0xff] }
 0x288   : > { %v2231_v9 = vpack.c.bf16 %v1134_v8, %v1132_v7  ;;  %v1131_v13 = vld [vmem:[#allocation8 + $0xa0] sm:$0xff] }
 0x289   : > { %2097 = vmatprep.mubr.f32.mxu1 %v824_v15  ;;  %v1133_v15 = vld [vmem:[#allocation8 + $0xb0] sm:$0xff] }
 0x28a   : > { %2098 = vmatmul.mubr.f32.vlgmr.msra.gmra.mrb[0].mxu1 %v825_v16  ;;  %v2233_v16 = vpack.c.bf16 %v1133_v15, %v1131_v13 }
 0x28b   : > { %2100 = vmatprep.mubr.f32.mxu1 %v826_v17  ;;  %v1136_v17 = vld [vmem:[#allocation8 + $0xc8] sm:$0xff] }
 0x28e   : > { %2101 = vmatmul.mubr.f32.gmra.mrb[2].mxu1 %v827_v19  ;;  %v1138_v19 = vld [vmem:[#allocation8 + $0xd8] sm:$0xff] }
 0x28f   : > { %1296 = vmatprep.mubr.f32.mxu1 %v2640_v11 }
 0x35d   : > { %v2099_v14 = vpop.f32.mrb[0].mxu1 }
 0x35e   : > { %v923_v18 = vadd.f32 %v2099_v14, %v1913_v12  ;;  %v917_v20 = vpop.f32.mrb[1].mxu1  ;;  %v1135_v14 = vld [vmem:[#allocation8 + $0xc0] sm:$0xff] }
 0x35f   : > { %v918_v21 = vadd.f32 %v1913_v12, %v917_v20 }
 0x360   : > { %v3026_v22 = vmax.f32 %v923_v18, 0.0  ;;  %v1137_v18 = vld [vmem:[#allocation8 + $0xd0] sm:$0xff] }
 0x361   : > { %v3028_v23 = vmax.f32 %v918_v21, 0.0  ;;  %v2102_v25 = vpop.f32.mrb[2].mxu1  ;;  %v2237_v20 = vpack.c.bf16 %v1137_v18, %v1135_v14  ;;  %v1140_v21 = vld [vmem:[#allocation8 + $0xe8] sm:$0xff]  ;;  %v1469_v14 = vld [vmem:[#allocation10] sm:$0xff] }
 0x362   : > { %v933_v26 = vadd.f32 %v2102_v25, %v1913_v12  ;;  %v927_v27 = vpop.f32.mrb[3].mxu1  ;;  %v1011_v32 = vmul.f32 %v3026_v22, %v3026_v22  ;;  %v1142_v25 = vld [vmem:[#allocation8 + $0xf8] sm:$0xff]  ;;  %v1470_v18 = vld [vmem:[#allocation10 + $0x8] sm:$0xff] }
 0x363   : > { %v2200_v28 = vpack.c.bf16 %v3026_v22, %v3028_v23  ;;  %v928_v29 = vadd.f32 %v1913_v12, %v927_v27  ;;  %v1010_v33 = vmul.f32 %v3028_v23, %v3028_v23  ;;  %v2235_v12 = vpack.c.bf16 %v1138_v19, %v1136_v17  ;;  %v1485_v17 = vld [vmem:[#allocation10 + $0x80] sm:$0xff]  ;;  %v1486_v19 = vld [vmem:[#allocation10 + $0x88] sm:$0xff] }
 0x364   : > { %v3032_v30 = vmax.f32 %v933_v26, 0.0  ;;  %v1139_v26 = vld [vmem:[#allocation8 + $0xe0] sm:$0xff]  ;;  %v2239_v27 = vpack.c.bf16 %v1142_v25, %v1140_v21  ;;  %v1487_v21 = vld [vmem:[#allocation10 + $0x90] sm:$0xff]  ;;  %v1488_v25 = vld [vmem:[#allocation10 + $0x98] sm:$0xff] }
 0x365   : > { %v3034_v31 = vmax.f32 %v928_v29, 0.0  ;;  %2201 = vmatpush3.bf16.msra.mxu0 %v2200_v28  ;;  %v2206_v37 = vpack.c.bf16 %v1011_v32, %v1010_v33  ;;  %v1141_v28 = vld [vmem:[#allocation8 + $0xf0] sm:$0xff] }
 0x366   : > { %2202 = vmatprep.subr.bf16.mxu0 %v2638_v10  ;;  %v1013_v35 = vmul.f32 %v3032_v30, %v3032_v30  ;;  %v2241_v29 = vpack.c.bf16 %v1141_v28, %v1139_v26  ;;  %v2263_v26 = vpack.c.bf16 %v1488_v25, %v1487_v21  ;;  %v1472_v28 = vld [vmem:[#allocation10 + $0x18] sm:$0xff]  ;;  %v1390_v25 = vld [vmem:[%s3258_s9] sm:$0x3] }
 0x367   : > { %v2203_v34 = vpack.c.bf16 %v3032_v30, %v3034_v31  ;;  %v1012_v36 = vmul.f32 %v3034_v31, %v3034_v31 }
 0x369   : > { %2204 = vmatpush3.bf16.msra.mxu0 %v2203_v34  ;;  %v2209_v38 = vpack.c.bf16 %v1013_v35, %v1012_v36 }
 0x36a   : > { %2205 = vmatprep.subr.bf16.mxu0 %v2638_v10 }
 0x36c   : > { %2112 = vmatmul.mubr.msk.f32.vlgmr.msra.gmra.mrb[8].mxu0 %vm552_vm0, %v2641_v24 }
 0x36d   : > { %2207 = vmatpush3.bf16.msra.mxu0 %v2206_v37  ;;  %2122 = vmatprep.mubr.msk.f32.mxu0 %vm2639_vm1, %v2640_v11 }
 0x36e   : > { %2208 = vmatprep.subr.bf16.mxu0 %v2638_v10 }
 0x371   : > { %2210 = vmatpush3.bf16.msra.mxu0 %v2209_v38 }
 0x372   : > { %2212 = vmatprep.subr.bf16.mxu0 %v2211_v41 }
 0x374   : > { %2123 = vmatmul.mubr.msk.f32.vlgmr.msra.gmra.mrb[10].mxu0 %vm552_vm0, %v2641_v24 }
 0x375   : > { %1207 = vmatprep.mubr.f32.mxu0 %v2640_v11  ;;  %2214 = vmatpush1.bf16.msra.mxu0 %v2213_v45 }
 0x376   : > { %2216 = vmatprep.subr.bf16.mxu0 %v2215_v49 }
 0x379   : > { %2218 = vmatpush1.bf16.msra.mxu0 %v2217_v50 }
 0x37a   : > { %2220 = vmatprep.subr.bf16.mxu0 %v2219_v53 }
 0x37d   : > { %2222 = vmatpush1.bf16.msra.mxu0 %v2221_v56 }
 0x37e   : > { %2224 = vmatprep.subr.bf16.mxu0 %v2223_v61 }
 0x381   : > { %2226 = vmatpush1.bf16.msra.mxu0 %v2225_v0 }
 0x382   : > { %2228 = vmatprep.subr.bf16.mxu0 %v2227_v3 }
 0x385   : > { %2230 = vmatpush1.bf16.msra.mxu0 %v2229_v6 }
 0x386   : > { %2232 = vmatprep.subr.bf16.mxu0 %v2231_v9 }
 0x389   : > { %2234 = vmatpush1.bf16.msra.mxu0 %v2233_v16 }
 0x38a   : > { %2236 = vmatprep.subr.bf16.mxu0 %v2235_v12  ;;  %v2259_v12 = vpack.c.bf16 %v1486_v19, %v1485_v17 }
 0x38d   : > { %2238 = vmatpush1.bf16.msra.mxu0 %v2237_v20  ;;  %v2261_v20 = vpack.c.bf16 %v1470_v18, %v1469_v14 }
 0x38e   : > { %2240 = vmatprep.subr.bf16.mxu0 %v2239_v27  ;;  %v1471_v27 = vld [vmem:[#allocation10 + $0x10] sm:$0xff] }
 0x391   : > { %2242 = vmatpush1.bf16.msra.mxu0 %v2241_v29  ;;  %v2265_v29 = vpack.c.bf16 %v1472_v28, %v1471_v27  ;;  %v2642_v27 = vmov 1966171168  }
 0x392   : > { %2291 = vmatprep.subr.bf16.mxu0 %v2638_v10  ;;  %v1411_v28 = vunpack.c.l.s4 %v2642_v27 }
 0x43f   : > { %v1006_v32 = vpop.f32.mrb[8].mxu0 }
 0x440   : > { %v2113_v33 = vpop.f32.mrb[9].mxu0  ;;  %v1084_v34 = vmul.f32 %v1006_v32, %v1006_v32 }
 0x441   : > { %v1490_v33 = vld [vmem:[#allocation10 + $0xa8] sm:$0xff] }
 0x447   : > { %v1080_v35 = vpop.f32.mrb[10].mxu0 }
 0x448   : > { %v1085_v36 = vsub.f32 %v1080_v35, %v1084_v34  ;;  %v2124_v37 = vpop.f32.mrb[11].mxu0  ;;  %v1473_v35 = vld [vmem:[#allocation10 + $0x20] sm:$0xff] }
 0x44a   : > { %v1086_v38 = vadd.f32 1e-05, %v1085_v36  ;;  %v1474_v36 = vld [vmem:[#allocation10 + $0x28] sm:$0xff] }
 0x44b   : > { %v2269_v37 = vpack.c.bf16 %v1474_v36, %v1473_v35 }
 0x44c   : > { %2403 = vrsqrt.f32 %v1086_v38  ;;  %v1491_v38 = vld [vmem:[#allocation10 + $0xb0] sm:$0xff] }
 0x456   : > { %v2404_v40 = vpop.eup %2403 }
 0x457   : > { %v1089_v41 = vmul.f32 %v2404_v40, %v1088_v39  ;;  %v1492_v39 = vld [vmem:[#allocation10 + $0xb8] sm:$0xff] }
 0x458   : > { %v2271_v40 = vpack.c.bf16 %v1492_v39, %v1491_v38 }
 0x459   : > { %v1091_v43 = vmul.f32 %v1089_v41, %v1006_v32  ;;  %v1096_v44 = vrot.slane %v1089_v41, %v3011_v59  ;;  %v1489_v32 = vld [vmem:[#allocation10 + $0xa0] sm:$0xff]  ;;  %v1475_v41 = vld [vmem:[#allocation10 + $0x30] sm:$0xff] }
 0x45a   : > { %v2267_v34 = vpack.c.bf16 %v1490_v33, %v1489_v32 }
 0x45b   : > { %v1092_v45 = vsub.f32 %v1090_v42, %v1091_v43  ;;  %v1097_v46 = vmul.f32 %v1096_v44, %v3028_v23  ;;  %v1098_v48 = vmul.f32 %v1096_v44, %v3026_v22  ;;  %v1099_v49 = vmul.f32 %v1096_v44, %v3034_v31  ;;  %v1476_v42 = vld [vmem:[#allocation10 + $0x38] sm:$0xff] }
 0x45c   : > { %v1100_v50 = vmul.f32 %v1096_v44, %v3032_v30  ;;  %v2273_v43 = vpack.c.bf16 %v1476_v42, %v1475_v41  ;;  %v1493_v44 = vld [vmem:[#allocation10 + $0xc0] sm:$0xff] }
 0x45d   : > { %v1105_v47 = vrot.slane %v1092_v45, %v3011_v59  ;;  %v1494_v45 = vld [vmem:[#allocation10 + $0xc8] sm:$0xff] }
 0x45f   : > { %v1107_v51 = vadd.f32 %v1105_v47, %v1097_v46  ;;  %v1108_v52 = vadd.f32 %v1105_v47, %v1098_v48  ;;  %v1109_v53 = vadd.f32 %v1105_v47, %v1099_v49  ;;  %v1110_v54 = vadd.f32 %v1105_v47, %v1100_v50  ;;  %v1477_v47 = vld [vmem:[#allocation10 + $0x40] sm:$0xff]  ;;  %v1478_v48 = vld [vmem:[#allocation10 + $0x48] sm:$0xff]  ;;  %v1495_v50 = vld [vmem:[#allocation10 + $0xd0] sm:$0xff] }
 0x460   : > { %v2275_v46 = vpack.c.bf16 %v1494_v45, %v1493_v44  ;;  %v2277_v49 = vpack.c.bf16 %v1478_v48, %v1477_v47 }
 0x461   : > { %1208 = vmatmul.mubr.f32.vlgmr.msra.gmra.mrb[12].mxu0 %v1107_v51  ;;  %v1496_v51 = vld [vmem:[#allocation10 + $0xd8] sm:$0xff] }
 0x462   : > { %1213 = vmatprep.mubr.f32.mxu0 %v2640_v11 }
 0x465   : > { %1214 = vmatmul.mubr.f32.gmra.mrb[14].mxu0 %v1108_v52  ;;  %v1479_v52 = vld [vmem:[#allocation10 + $0x50] sm:$0xff] }
 0x466   : > { %1219 = vmatprep.mubr.f32.mxu0 %v2640_v11 }
 0x469   : > { %1220 = vmatmul.mubr.f32.gmra.mrb[16].mxu0 %v1109_v53  ;;  %v2279_v53 = vpack.c.bf16 %v1496_v51, %v1495_v50 }
 0x46a   : > { %1225 = vmatprep.mubr.f32.mxu0 %v2640_v11 }
 0x46d   : > { %1226 = vmatmul.mubr.f32.gmra.mrb[18].mxu0 %v1110_v54  ;;  %v1480_v54 = vld [vmem:[#allocation10 + $0x58] sm:$0xff] }
 0x46e   : > { %2133 = vmatprep.mubr.msk.f32.mxu0 %vm2639_vm1, %v2640_v11 }
 0x534   : > { %v3074_v22 = vpop.f32.mrb[12].mxu0 }
 0x535   : > { %v3076_v23 = vpop.f32.mrb[13].mxu0  ;;  %v1303_v31 = vmul.f32 %v3074_v22, %v3074_v22 }
 0x536   : > { %v1304_v60 = vmul.f32 %v3076_v23, %v3076_v23 }
 0x538   : > { %v3078_v30 = vpop.f32.mrb[14].mxu0 }
 0x539   : > { %v2245_v55 = vpack.c.bf16 %v3078_v30, %v3074_v22  ;;  %v1305_v56 = vmul.f32 %v3078_v30, %v3078_v30  ;;  %v3086_v58 = vpop.f32.mrb[15].mxu0 }
 0x53a   : > { %v2243_v61 = vpack.c.bf16 %v3086_v58, %v3076_v23  ;;  %v1306_v62 = vmul.f32 %v3086_v58, %v3086_v58 }
 0x53b   : > { %v2253_v63 = vpack.c.bf16 %v1305_v56, %v1303_v31  ;;  %v1497_v31 = vld [vmem:[#allocation10 + $0xe0] sm:$0xff]  ;;  %v2281_v56 = vpack.c.bf16 %v1480_v54, %v1479_v52 }
 0x53c   : > { %v3094_v0 = vpop.f32.mrb[16].mxu0  ;;  %2244 = vmatprep.subr.bf16.mxu1 %v2243_v61  ;;  %v2251_v1 = vpack.c.bf16 %v1306_v62, %v1304_v60  ;;  %v1481_v61 = vld [vmem:[#allocation10 + $0x60] sm:$0xff]  ;;  %v1482_v62 = vld [vmem:[#allocation10 + $0x68] sm:$0xff] }
 0x53d   : > { %v3096_v2 = vpop.f32.mrb[17].mxu0  ;;  %2246 = vmatpush1.bf16.msra.mxu1 %v2245_v55  ;;  %v1307_v4 = vmul.f32 %v3094_v0, %v3094_v0  ;;  %v1498_v55 = vld [vmem:[#allocation10 + $0xe8] sm:$0xff] }
 0x53e   : > { %v1308_v8 = vmul.f32 %v3096_v2, %v3096_v2  ;;  %v2283_v60 = vpack.c.bf16 %v1498_v55, %v1497_v31 }
 0x540   : > { %v3098_v3 = vpop.f32.mrb[18].mxu0 }
 0x541   : > { %v2249_v5 = vpack.c.bf16 %v3098_v3, %v3094_v0  ;;  %v1309_v6 = vmul.f32 %v3098_v3, %v3098_v3  ;;  %v3106_v7 = vpop.f32.mrb[19].mxu0 }
 0x542   : > { %v2247_v9 = vpack.c.bf16 %v3106_v7, %v3096_v2  ;;  %v1310_v13 = vmul.f32 %v3106_v7, %v3106_v7 }
 0x543   : > { %v2257_v15 = vpack.c.bf16 %v1309_v6, %v1307_v4  ;;  %v2285_v4 = vpack.c.bf16 %v1482_v62, %v1481_v61  ;;  %v1483_v6 = vld [vmem:[#allocation10 + $0x70] sm:$0xff] }
 0x544   : > { %2248 = vmatprep.subr.bf16.mxu1 %v2247_v9  ;;  %v2255_v16 = vpack.c.bf16 %v1310_v13, %v1308_v8  ;;  %v1484_v8 = vld [vmem:[#allocation10 + $0x78] sm:$0xff] }
 0x545   : > { %2250 = vmatpush1.bf16.msra.mxu1 %v2249_v5  ;;  %v2289_v9 = vpack.c.bf16 %v1484_v8, %v1483_v6 }
 0x546   : > { %2252 = vmatprep.subr.bf16.mxu1 %v2251_v1  ;;  %v1500_v1 = vld [vmem:[#allocation10 + $0xf8] sm:$0xff] }
 0x548   : > { %1916 = vmatmul.mubr.msk.f32.vlgmr.msra.gmra.mrb[4].mxu1 %vm552_vm0, %v2641_v24 }
 0x549   : > { %2254 = vmatpush1.bf16.msra.mxu1 %v2253_v63  ;;  %1375 = vmatprep.mubr.f32.mxu1 %v2640_v11  ;;  %v1499_v63 = vld [vmem:[#allocation10 + $0xf0] sm:$0xff] }
 0x54a   : > { %2256 = vmatprep.subr.bf16.mxu1 %v2255_v16  ;;  %v2287_v5 = vpack.c.bf16 %v1500_v1, %v1499_v63 }
 0x54d   : > { %2258 = vmatpush1.bf16.msra.mxu1 %v2257_v15 }
 0x54e   : > { %2260 = vmatprep.subr.bf16.mxu1 %v2259_v12 }
 0x550   : > { %1917 = vmatmul.mubr.msk.f32.vlgmr.msra.gmra.mrb[6].mxu1 %vm552_vm0, %v2641_v24 }
 0x551   : > { %2262 = vmatpush3.bf16.msra.mxu1 %v2261_v20 }
 0x552   : > { %2264 = vmatprep.subr.bf16.mxu1 %v2263_v26  ;;  %v1398_v26 = vsub.s32 1, %v3005_v57 }
 0x554   : > { %v1399_v32 = vrot.slane %v1390_v25, %v1398_v26 }
 0x555   : > { %2266 = vmatpush3.bf16.msra.mxu1 %v2265_v29  ;;  %v1395_v29 = vrot.slane %v1390_v25, %v3011_v59 }
 0x556   : > { %2268 = vmatprep.subr.bf16.mxu1 %v2267_v34  ;;  %v1412_v34 = vunpack.c.0.s8 %v1411_v28 }
 0x558   : > { %v1415_v41 = vsub.s32 %v1412_v34, %v3005_v57 }
 0x559   : > { %2270 = vmatpush3.bf16.msra.mxu1 %v2269_v37 }
 0x55a   : > { %2272 = vmatprep.subr.bf16.mxu1 %v2271_v40 }
 0x55d   : > { %2274 = vmatpush3.bf16.msra.mxu1 %v2273_v43 }
 0x55e   : > { %2276 = vmatprep.subr.bf16.mxu1 %v2275_v46 }
 0x561   : > { %2278 = vmatpush3.bf16.msra.mxu1 %v2277_v49 }
 0x562   : > { %2280 = vmatprep.subr.bf16.mxu1 %v2279_v53 }
 0x565   : > { %2282 = vmatpush3.bf16.msra.mxu1 %v2281_v56 }
 0x566   : > { %2284 = vmatprep.subr.bf16.mxu1 %v2283_v60 }
 0x569   : > { %2286 = vmatpush3.bf16.msra.mxu1 %v2285_v4 }
 0x56a   : > { %2288 = vmatprep.subr.bf16.mxu1 %v2287_v5 }
 0x56d   : > { %2290 = vmatpush3.bf16.msra.mxu1 %v2289_v9 }
 0x61b   : > { %v1298_v13 = vpop.f32.mrb[4].mxu1 }
 0x61c   : > { %v1300_v15 = vpop.f32.mrb[5].mxu1  ;;  %v1382_v16 = vmul.f32 %v1298_v13, %v1298_v13 }
 0x61d   : > { %v1383_v17 = vmul.f32 %v1300_v15, %v1300_v15 }
 0x623   : > { %v1377_v19 = vpop.f32.mrb[6].mxu1 }
 0x624   : > { %v1384_v12 = vsub.f32 %v1377_v19, %v1382_v16  ;;  %v1379_v14 = vpop.f32.mrb[7].mxu1 }
 0x625   : > { %v1385_v18 = vsub.f32 %v1379_v14, %v1383_v17 }
 0x626   : > { %v1386_v20 = vadd.f32 1e-05, %v1384_v12 }
 0x627   : > { %v1387_v21 = vadd.f32 1e-05, %v1385_v18 }
 0x628   : > { %2405 = vrsqrt.f32 %v1386_v20 }
 0x629   : > { %2407 = vrsqrt.f32 %v1387_v21 }
 0x632   : > { %v2406_v33 = vpop.eup %2405 }
 0x633   : > { %v2408_v35 = vpop.eup %2407  ;;  %v1402_v36 = vmul.f32 %v2406_v33, %v1395_v29 }
 0x634   : > { %v1403_v37 = vmul.f32 %v2408_v35, %v1399_v32 }
 0x635   : > { %v1405_v38 = vmul.f32 %v1402_v36, %v1298_v13  ;;  %v1429_v39 = vrot.slane %v1402_v36, %v3011_v59 }
 0x636   : > { %v1406_v40 = vmul.f32 %v1403_v37, %v1300_v15  ;;  %v1433_v42 = vrot.slane %v1403_v37, %v3011_v59 }
 0x637   : > { %v1434_v43 = vmul.f32 %v1429_v39, %v3074_v22  ;;  %v1436_v44 = vmul.f32 %v1429_v39, %v3078_v30  ;;  %v1438_v45 = vmul.f32 %v1429_v39, %v3094_v0  ;;  %v1440_v46 = vmul.f32 %v1429_v39, %v3098_v3  ;;  %v1404_v22 = vld [vmem:[%s3259_s1] sm:$0x3]  ;;  %s3162_s1 = scalar_lea.hbm %s3262_s21, %s1926_s25 }
 0x638   : > { %v1409_v47 = vcombine.low %v1405_v38, %v1406_v40  ;;  %v1435_v48 = vmul.f32 %v1433_v42, %v3076_v23  ;;  %v1437_v49 = vmul.f32 %v1433_v42, %v3086_v58  ;;  %v1439_v50 = vmul.f32 %v1433_v42, %v3096_v2 }
 0x639   : > { %v1441_v51 = vmul.f32 %v1433_v42, %v3106_v7 }
 0x63a   : > { %v1416_v57 = vrot.slane %v1409_v47, %v1415_v41 }
 0x63c   : > { %v1423_v52 = vrot.slane %v1416_v57, %v1415_v41 }
 0x63e   : > { %v1425_v30 = vsub.f32 %v1404_v22, %v1423_v52 }
 0x640   : > { %v1450_v53 = vrot.slane %v1425_v30, %v1398_v26  ;;  %v1446_v0 = vrot.slane %v1425_v30, %v3011_v59 }
 0x642   : > { %v1454_v3 = vadd.f32 %v1450_v53, %v1435_v48  ;;  %v1453_v54 = vadd.f32 %v1446_v0, %v1434_v43  ;;  %v1456_v31 = vadd.f32 %v1450_v53, %v1437_v49  ;;  %v1455_v23 = vadd.f32 %v1446_v0, %v1436_v44 }
 0x643   : > { %v1458_v55 = vadd.f32 %v1450_v53, %v1439_v50  ;;  %v1457_v58 = vadd.f32 %v1446_v0, %v1438_v45  ;;  %v1460_v56 = vadd.f32 %v1450_v53, %v1441_v51  ;;  %v1459_v2 = vadd.f32 %v1446_v0, %v1440_v46 }
 0x644   : > { %v1462_v60 = vmax.f32 %v1454_v3, 0.0  ;;  %v1461_v7 = vmax.f32 %v1453_v54, 0.0  ;;  %v1464_v61 = vmax.f32 %v1456_v31, 0.0  ;;  %v1463_v62 = vmax.f32 %v1455_v23, 0.0 }
 0x645   : > { %v1466_v63 = vmax.f32 %v1458_v55, 0.0  ;;  %v1465_v1 = vmax.f32 %v1457_v58, 0.0  ;;  %v1468_v4 = vmax.f32 %v1460_v56, 0.0  ;;  %v1467_v5 = vmax.f32 %v1459_v2, 0.0 }
 0x646   : > { %1565 = vmatprep.mubr.f32.mxu1 %v1462_v60 }
 0x647   : > { %1566 = vmatmul.mubr.f32.vlgmr.msra.gmra.mrb[8].mxu1 %v1461_v7 }
 0x648   : > { %1570 = vmatprep.mubr.f32.mxu1 %v1464_v61 }
 0x64b   : > { %1571 = vmatmul.mubr.f32.gmra.mrb[10].mxu1 %v1463_v62 }
 0x64c   : > { %1575 = vmatprep.mubr.f32.mxu1 %v1466_v63 }
 0x64f   : > { %1576 = vmatmul.mubr.f32.gmra.mrb[12].mxu1 %v1465_v1 }
 0x650   : > { %1580 = vmatprep.mubr.f32.mxu1 %v1468_v4 }
 0x653   : > { %1581 = vmatmul.mubr.f32.gmra.mrb[14].mxu1 %v1467_v5 }
 0x71a   : > { %v2007_v6 = vpop.f32.mrb[8].mxu1 }
 0x71b   : > { %v2008_v8 = vpop.f32.mrb[9].mxu1 }
 0x71c   : > { %v2009_v9 = vadd.f32 %v2008_v8, %v2007_v6 }
 0x71e   : > { %v2010_v13 = vpop.f32.mrb[10].mxu1  ;;  %v1656_v27 = vmul.f32 %v2009_v9, %v2009_v9 }
 0x71f   : > { %v2011_v15 = vpop.f32.mrb[11].mxu1 }
 0x720   : > { %v2012_v16 = vadd.f32 %v2011_v15, %v2010_v13 }
 0x722   : > { %v2292_v17 = vpack.c.bf16 %v2012_v16, %v2009_v9  ;;  %v2013_v19 = vpop.f32.mrb[12].mxu1  ;;  %v1657_v25 = vmul.f32 %v2012_v16, %v2012_v16 }
 0x723   : > { %v2014_v12 = vpop.f32.mrb[13].mxu1 }
 0x724   : > { %v2015_v14 = vadd.f32 %v2014_v12, %v2013_v19  ;;  %2293 = vmatpush3.bf16.msra.mxu0 %v2292_v17  ;;  %v2298_v28 = vpack.c.bf16 %v1657_v25, %v1656_v27 }
 0x725   : > { %2294 = vmatprep.subr.bf16.mxu0 %v2638_v10 }
 0x726   : > { %v2016_v18 = vpop.f32.mrb[14].mxu1  ;;  %v1658_v32 = vmul.f32 %v2015_v14, %v2015_v14 }
 0x727   : > { %v2017_v20 = vpop.f32.mrb[15].mxu1 }
 0x728   : > { %v2018_v21 = vadd.f32 %v2017_v20, %v2016_v18 }
 0x72a   : > { %v2295_v26 = vpack.c.bf16 %v2018_v21, %v2015_v14  ;;  %v1659_v29 = vmul.f32 %v2018_v21, %v2018_v21 }
 0x72c   : > { %2296 = vmatpush3.bf16.msra.mxu0 %v2295_v26  ;;  %v2301_v33 = vpack.c.bf16 %v1659_v29, %v1658_v32 }
 0x72d   : > { %2297 = vmatprep.subr.bf16.mxu0 %v2638_v10 }
 0x72f   : > { %2134 = vmatmul.mubr.msk.f32.vlgmr.msra.gmra.mrb[20].mxu0 %vm552_vm0, %v2641_v24 }
 0x730   : > { %2299 = vmatpush3.bf16.msra.mxu0 %v2298_v28  ;;  %2144 = vmatprep.mubr.msk.f32.mxu0 %vm2639_vm1, %v2640_v11  ;;  %v1734_v11 = vld [vmem:[%s3260_s12] sm:$0x1]  ;;  %s2559_s12 = scalar_lea.vmem %s2558_s26, 1024 }
 0x731   : > { %2300 = vmatprep.subr.bf16.mxu0 %v2638_v10  ;;  %p2561_p1 = scmp.lt.s32.totalorder %s2559_s12, %s2553_s23 }
 0x733   : > { %p2562_p2 = por %p2561_p1, %p2560_p12 }
 0x734   : > { %2302 = vmatpush3.bf16.msra.mxu0 %v2301_v33 }
 0x735   : > { %p2563_p13 = pnand %p2562_p2, %p2556_p7 }
 0x737   : > { %2145 = vmatmul.mubr.msk.f32.vlgmr.msra.gmra.mrb[22].mxu0 %vm552_vm0, %v2641_v24  ;;  %v1736_v24 = vld [vmem:[%s3261_s20] sm:$0x1] }
 0x802   : > { %v1652_v34 = vpop.f32.mrb[20].mxu0 }
 0x803   : > { %v2135_v35 = vpop.f32.mrb[21].mxu0  ;;  %v1730_v36 = vmul.f32 %v1652_v34, %v1652_v34 }
 0x80a   : > { %v1726_v37 = vpop.f32.mrb[22].mxu0 }
 0x80b   : > { %v1731_v38 = vsub.f32 %v1726_v37, %v1730_v36  ;;  %v2146_v39 = vpop.f32.mrb[23].mxu0 }
 0x80d   : > { %v1732_v40 = vadd.f32 1e-05, %v1731_v38 }
 0x80f   : > { %2409 = vrsqrt.f32 %v1732_v40 }
 0x819   : > { %v2410_v10 = vpop.eup %2409 }
 0x81a   : > { %v1735_v41 = vmul.f32 %v2410_v10, %v1734_v11 }
 0x81c   : > { %v1737_v42 = vmul.f32 %v1735_v41, %v1652_v34  ;;  %v1742_v43 = vrot.slane %v1735_v41, %v3011_v59 }
 0x81e   : > { %v1738_v44 = vsub.f32 %v1736_v24, %v1737_v42  ;;  %v1743_v45 = vmul.f32 %v2009_v9, %v1742_v43  ;;  %v1744_v46 = vmul.f32 %v2012_v16, %v1742_v43  ;;  %v1745_v47 = vmul.f32 %v2015_v14, %v1742_v43 }
 0x81f   : > { %v1746_v48 = vmul.f32 %v2018_v21, %v1742_v43 }
 0x820   : > { %v1751_v49 = vrot.slane %v1738_v44, %v3011_v59 }
 0x822   : > { %v1753_v50 = vadd.f32 %v1751_v49, %v1743_v45  ;;  %v1754_v51 = vadd.f32 %v1751_v49, %v1744_v46  ;;  %v1755_v57 = vadd.f32 %v1751_v49, %v1745_v47  ;;  %v1756_v22 = vadd.f32 %v1751_v49, %v1746_v48 }
 0x824   : > { %v1757_v59 = vmax.f32 %v1753_v50, 0.0  ;;  %v1758_v52 = vmax.f32 %v1754_v51, 0.0  ;;  %v1759_v30 = vmax.f32 %v1755_v57, 0.0  ;;  %v1760_v53 = vmax.f32 %v1756_v22, 0.0 }
 0x826   : > { %1761 = vst [vmem:[%s543_s10] sm:$0xff] %v1757_v59  ;;  %1762 = vst [vmem:[%s543_s10 + $0x8] sm:$0xff] %v1758_v52 }
 0x827   : > { %1763 = vst [vmem:[%s543_s10 + $0x10] sm:$0xff] %v1759_v30  ;;  %1764 = vst [vmem:[%s543_s10 + $0x18] sm:$0xff] %v1760_v53 }
 0x828   : > { %2566 = shalt.err (!%p2563_p13)
}
 0x829   : > { %s2567_s24 = scalar_lea.hbm %s3162_s1, 512  ;;  %s2571_s25 = scalar_lea.hbm %s3262_s21, 1024 }
 0x82a   : > { %p2568_p9 = scmp.ne.s32.totalorder %s3162_s1, %s2567_s24  ;;  %p2572_p6 = scmp.lt.u32.totalorder %s3162_s1, %s3262_s21 }
 0x82b   : > { %p2573_p4 = scmp.lt.u32.totalorder %s2571_s25, %s2567_s24  ;;  %p2575_p10 = scmp.lt.u32.totalorder %s2567_s24, %s3162_s1 }
 0x82c   : > { %p2569_p0 = pnand %p2568_p9, %p2896_p3 }
 0x82d   : > { %p2574_p8 = por %p2573_p4, %p2572_p6 }
 0x82e   : > { %p2570_p11 = pneg %p2569_p0 }
 0x82f   : > { %p2576_p5 = por %p2575_p10, %p2574_p8 }
 0x831   : > { %p2577_p7 = pnand %p2576_p5, %p2570_p11 }
 0x833   : > { %2580 = shalt.err (!%p2577_p7)
}
 0x834   : > { %s2644_s19 = smov 128   ;;  %s2645_s23 = smov 8  }
 0x835   : > { %2321 = dma.vmem_to_hbm [thread:$0]  (%p2896_p3), %s3164_s18, 512, %s3162_s1, %s1766_s17, %s2644_s19, %s2644_s19, %s2645_s23  }
 0x836 PF: > { %s3263_s14 = sld [smem:[#allocation16_spill]]  ;;  %s3264_s26 = sld [smem:[#allocation17_spill]] }
 0x837   : > { %p3266_p1 = scmp.ge.s32.totalorder %s2627_s16, 2 }
 0x83c   : > { %s1794_s12 = sand.u32 1, %s3263_s14   ;;  %p3265_p12 = scmp.ne.s32.totalorder %s3264_s26, 0 }
 0x83d   : > { %s1795_s24 = scalar_lea.sflag [#allocation4], %s1794_s12 }
 0x83e   : > { %p2341_p2 = pnand %p3266_p1, %p3265_p12 }
 0x840   : > { %2610 = dma.done.wait (!%p2341_p2), %s1795_s24, 512  }
 0x841   : > { %2612 = vsyncadd (!%p2341_p2), %s1795_s24, 4294966784  ;;  %s3267_s22 = smov %s2883_s29  ;;  %p29_p13 = scmp.ge.s32.totalorder %s2883_s29, 4  }
 0x842   : > { %s3268_s29 = smov %s2619_s30  ;;  %s3269_s30 = smov %s2623_s15 }
 0x843   : > { %s3270_s15 = smov %s2892_s13  ;;  %s3271_s16 = smov %s3267_s22 }
 0x844   :  { %31 = sbr.rel (!%p29_p13) target bundleno = 14 (0xe), region = 137 }
 0x84b   :  { %1800 = vsyncpa [#allocation3], 1 }
 0x84c   :  { %1802 = vsyncpa [#allocation3 + $0x1], 1 }
 0x84d   :  { %1803 = vsyncpa [#allocation6], 1 }
 0x84e   :  { %1804 = vsyncpa [#allocation9], 1 }
 0x84f   :  { %1805 = vsyncpa [#allocation4], 1 }
 0x850   :  { %1807 = vsyncpa [#allocation4 + $0x1], 1 }

</bundles_post_ra>
